<compile_context>
chip_gen: v7x
topology: tpu7x:2x2x1
jax: 0.10.0
libtpu: 0.0.40
codegen_flags: <defaults>
</compile_context>

<pallas_src>
import functools

import jax
import jax.numpy as jnp
from jax.experimental import pallas as pl
from jax.experimental.pallas import tpu as pltpu

LANE = 128


# ----------------------------- fused Pallas kernel --------------------------

def fused_gcn_kernel(a_ref, x_ref,
                     w1_ref, w2_ref, w3_ref, w4_ref, w5_ref,
                     shift_ref, b5_ref, o_ref, *, num_classes):
    """5-layer GCN forward for ONE graph of the batch, fully VMEM-resident.

    a_ref   : (1, N, N)        bf16  normalized adjacency A_hat
    x_ref   : (1, N, Cin_pad)  bf16  node features (zero-padded)
    w1..w5  : bf16 weights; BN scale already folded into W1..W4 columns,
              W1 rows / W5 cols zero-padded to 128
    shift   : (4, H) f32       folded BN(eval) shift + conv-bias
    b5_ref  : (1, Cout_pad) f32 final conv bias (zero-padded)
    o_ref   : (1, N, Cout_pad) f32 log_softmax output (lane-dense)
    """
    a = a_ref[0]                                              # (N, N), load once
    x = x_ref[0]                                              # (N, Cin_pad)

    # ----- layer 1: (A @ X) @ W1  (Cin_pad=128 < Cout=256 -> aggregate first)
    ax = jnp.dot(a, x, preferred_element_type=jnp.float32)
    h = jnp.dot(ax.astype(jnp.bfloat16), w1_ref[...],
                preferred_element_type=jnp.float32)
    # BN scale is folded into W1 columns; epilogue = +shift, ReLU, bf16 downcast.
    h = jnp.maximum(h + shift_ref[0:1, :], 0.0).astype(jnp.bfloat16)

    # ----- layers 2..4: A @ (h @ W)  (square 256x256, order symmetric) -------
    for li, w_ref in ((1, w2_ref), (2, w3_ref), (3, w4_ref)):
        hw = jnp.dot(h, w_ref[...], preferred_element_type=jnp.float32)
        h = jnp.dot(a, hw.astype(jnp.bfloat16),
                    preferred_element_type=jnp.float32)
        h = jnp.maximum(h + shift_ref[li:li + 1, :], 0.0).astype(jnp.bfloat16)

    # ----- layer 5: A @ (h @ W5) + b5, masked log_softmax over real classes --
    hw = jnp.dot(h, w5_ref[...], preferred_element_type=jnp.float32)
    logits = jnp.dot(a, hw.astype(jnp.bfloat16),
                     preferred_element_type=jnp.float32) + b5_ref[...]
    col = jax.lax.broadcasted_iota(jnp.int32, logits.shape, dimension=1)
    logits = jnp.where(col < num_classes, logits, -1e30)      # mask pad classes
    m = jnp.max(logits, axis=1, keepdims=True)
    s = jnp.sum(jnp.exp(logits - m), axis=1, keepdims=True)
    o_ref[0] = (logits - m) - jnp.log(s)


# ------------------------------ wrapper --------------------------------------

def _pad_to(x, axis, target):
    pad = target - x.shape[axis]
    if pad <= 0:
        return x
    cfg = [(0, 0)] * x.ndim
    cfg[axis] = (0, pad)
    return jnp.pad(x, cfg)


def gcn_net_forward(a_hat, x, params, eps=1e-5):
    """Batched GCNNet forward (eval mode) as one fused, batched Pallas call.

    a_hat : (B, N, N) f32 normalized adjacency per graph
    x     : (B, N, Cin) f32 node features per graph
    """
    B, N, in_c = x.shape
    hidden = params["w"][0].shape[1]
    out_c = params["w"][4].shape[1]
    in_pad = max(LANE, ((in_c + LANE - 1) // LANE) * LANE)
    out_pad = max(LANE, ((out_c + LANE - 1) // LANE) * LANE)

    # Lane-dense padding (zeros -> results are bit-for-bit unaffected).
    x_p = _pad_to(x, 2, in_pad)

    # Fold conv bias + BatchNorm (eval) into per-feature scale/shift; the scale
    # is pushed into the weight columns (it commutes through A aggregation):
    #   relu(sc*(A@(h@W)+b-mean)+beta) == relu(A@(h@(W*sc)) + shift)
    ws, shifts = [], []
    for li in range(4):
        gamma, beta = params["bn_gamma"][li], params["bn_beta"][li]
        mean, var = params["bn_mean"][li], params["bn_var"][li]
        bias = params["b"][li][0]
        sc = gamma / jnp.sqrt(var + eps)                      # (H,)
        sh = beta + sc * (bias - mean)                        # (H,)
        ws.append(params["w"][li] * sc[None, :])
        shifts.append(sh)
    ws.append(params["w"][4])
    shift_all = jnp.stack(shifts).astype(jnp.float32)         # (4, H)

    w1_p = _pad_to(ws[0], 0, in_pad)                          # pad input rows
    w5_p = _pad_to(ws[4], 1, out_pad)                         # pad output cols
    b5_p = _pad_to(params["b"][4], 1, out_pad).astype(jnp.float32)

    # bf16 MXU operands; accumulation + epilogues stay f32 inside the kernel.
    a_bf = a_hat.astype(jnp.bfloat16)
    x_bf = x_p.astype(jnp.bfloat16)
    ws_bf = [w1_p.astype(jnp.bfloat16),
             ws[1].astype(jnp.bfloat16),
             ws[2].astype(jnp.bfloat16),
             ws[3].astype(jnp.bfloat16),
             w5_p.astype(jnp.bfloat16)]

    kernel = functools.partial(fused_gcn_kernel, num_classes=out_c)
    out_padded = pl.pallas_call(
        kernel,
        out_shape=jax.ShapeDtypeStruct((B, N, out_pad), jnp.float32),
        grid=(B,),
        in_specs=[
            pl.BlockSpec((1, N, N), lambda b: (b, 0, 0)),          # A_hat[b]
            pl.BlockSpec((1, N, in_pad), lambda b: (b, 0, 0)),     # X[b]
            pl.BlockSpec((in_pad, hidden), lambda b: (0, 0)),      # W1 (const)
            pl.BlockSpec((hidden, hidden), lambda b: (0, 0)),      # W2 (const)
            pl.BlockSpec((hidden, hidden), lambda b: (0, 0)),      # W3 (const)
            pl.BlockSpec((hidden, hidden), lambda b: (0, 0)),      # W4 (const)
            pl.BlockSpec((hidden, out_pad), lambda b: (0, 0)),     # W5 (const)
            pl.BlockSpec((4, hidden), lambda b: (0, 0)),           # shifts
            pl.BlockSpec((1, out_pad), lambda b: (0, 0)),          # b5
        ],
        out_specs=pl.BlockSpec((1, N, out_pad), lambda b: (b, 0, 0)),
        compiler_params=pltpu.CompilerParams(
            dimension_semantics=("parallel",),        # batch axis -> both TCs
            vmem_limit_bytes=8 * 1024 * 1024),        # real footprint ~2-3 MiB
    )(a_bf, x_bf, *ws_bf, shift_all, b5_p)

    return out_padded[:, :, :out_c]


# --------------------------- parameter construction --------------------------

def make_gcn_params(key, in_channels, out_channels, hidden=256):
    dims = [in_channels, hidden, hidden, hidden, hidden, out_channels]
    params = {"w": [], "b": [], "bn_gamma": [], "bn_beta": [],
              "bn_mean": [], "bn_var": []}
    for li in range(5):
        key, kw, kg, kb = jax.random.split(key, 4)
        fan_in, fan_out = dims[li], dims[li + 1]
        limit = (6.0 / (fan_in + fan_out)) ** 0.5
        params["w"].append(jax.random.uniform(kw, (fan_in, fan_out),
                                              jnp.float32, -limit, limit))
        params["b"].append(jnp.zeros((1, fan_out), jnp.float32))
        if li < 4:  # BN only after conv1..conv4
            params["bn_gamma"].append(
                1.0 + 0.1 * jax.random.normal(kg, (fan_out,), jnp.float32))
            params["bn_beta"].append(
                0.1 * jax.random.normal(kb, (fan_out,), jnp.float32))
            params["bn_mean"].append(jnp.zeros((fan_out,), jnp.float32))
            params["bn_var"].append(jnp.ones((fan_out,), jnp.float32))
    return params


def build_normalized_adjacency(edge_index, num_nodes):
    """Dense PyG-style gcn_norm: A[dst, src] += 1, add *remaining* self-loops,
    symmetric deg^-1/2 normalization.  Graph-dependent only -> compute once."""
    src, dst = edge_index[0], edge_index[1]
    a = jnp.zeros((num_nodes, num_nodes), jnp.float32).at[dst, src].add(1.0)
    diag = jnp.diagonal(a)
    a = a + jnp.diag(jnp.where(diag > 0.0, 0.0, 1.0))   # only missing self-loops
    deg = jnp.sum(a, axis=1)
    d_inv_sqrt = jnp.where(deg > 0, jax.lax.rsqrt(deg), 0.0)
    return d_inv_sqrt[:, None] * a * d_inv_sqrt[None, :]


# ------------------------------- reference -----------------------------------

def gcn_reference_single(a_hat, x, params, eps=1e-5):
    """Pure-JAX f32 reference (eval-mode forward) for one graph."""
    h = x
    for li in range(5):
        h = a_hat @ (h @ params["w"][li]) + params["b"][li]
        if li < 4:
            sc = params["bn_gamma"][li] / jnp.sqrt(params["bn_var"][li] + eps)
            h = sc * (h - params["bn_mean"][li]) + params["bn_beta"][li]
            h = jnp.maximum(h, 0.0)
            # dropout(p=0.5, training=False) -> identity
    return jax.nn.log_softmax(h, axis=1)


# --------------------------------- main ---------------------------------------

if __name__ == "__main__":
    B = 4             # graphs per batch (amortizes launch; feeds both v7x TCs)
    N = 128           # nodes per graph
    IN_C = 32         # in_channels
    OUT_C = 32        # out_channels (classes)
    E = 512           # edges per graph

    key = jax.random.PRNGKey(0)
    k_x, k_e, k_p = jax.random.split(key, 3)

    x = jax.random.normal(k_x, (B, N, IN_C), jnp.float32)
    edge_index = jax.random.randint(k_e, (B, 2, E), 0, N)          # (B, 2, E)

    params = make_gcn_params(k_p, IN_C, OUT_C, hidden=256)

    # A_hat depends only on the graphs: build once, outside the jitted forward.
    a_hat = jax.vmap(lambda ei: build_normalized_adjacency(ei, N))(edge_index)
    a_hat = jax.block_until_ready(a_hat)

    fwd = jax.jit(lambda a_, x_: gcn_net_forward(a_, x_, params))
    out = jax.block_until_ready(fwd(a_hat, x))

    assert out.shape == (B, N, OUT_C)
    assert bool(jnp.all(jnp.isfinite(out)))
    # log_softmax rows should sum (in prob space) to ~1
    assert bool(jnp.allclose(jnp.sum(jnp.exp(out), axis=2), 1.0, atol=1e-3))

    # Gross-error check vs. f32 reference (bf16 matmuls -> lenient tolerance).
    ref = jax.vmap(lambda a_, x_: gcn_reference_single(a_, x_, params))(a_hat, x)
    max_diff = float(jnp.max(jnp.abs(out - ref)))
    assert max_diff < 0.5, f"max |pallas - ref| = {max_diff}"

    print("KERNEL_OK")
</pallas_src>

<mosaic_0001>
module attributes {stable_mosaic.version = 11 : i64} {
  func.func @fused_gcn_kernel(%arg0: i32, %arg1: memref<1x128x128xbf16, #tpu.memory_space<vmem>>, %arg2: memref<1x128x128xbf16, #tpu.memory_space<vmem>>, %arg3: memref<128x256xbf16, #tpu.memory_space<vmem>>, %arg4: memref<256x256xbf16, #tpu.memory_space<vmem>>, %arg5: memref<256x256xbf16, #tpu.memory_space<vmem>>, %arg6: memref<256x256xbf16, #tpu.memory_space<vmem>>, %arg7: memref<256x128xbf16, #tpu.memory_space<vmem>>, %arg8: memref<4x256xf32, #tpu.memory_space<vmem>>, %arg9: memref<1x128xf32, #tpu.memory_space<vmem>>, %arg10: memref<1x128x128xf32, #tpu.memory_space<vmem>>) attributes {dimension_semantics = [#tpu.dimension_semantics<parallel>], iteration_bounds = array<i64: 4>, scalar_prefetch = 0 : i64, scratch_operands = 0 : i64, tpu.core_type = #tpu.core_type<tc>, window_params = [{transform_indices = @transform_0, window_bounds = array<i64: 1, 128, 128>}, {transform_indices = @transform_1, window_bounds = array<i64: 1, 128, 128>}, {pipeline_mode = #tpu.pipeline_mode<synchronous>, transform_indices = @transform_2, window_bounds = array<i64: 128, 256>}, {pipeline_mode = #tpu.pipeline_mode<synchronous>, transform_indices = @transform_3, window_bounds = array<i64: 256, 256>}, {pipeline_mode = #tpu.pipeline_mode<synchronous>, transform_indices = @transform_4, window_bounds = array<i64: 256, 256>}, {pipeline_mode = #tpu.pipeline_mode<synchronous>, transform_indices = @transform_5, window_bounds = array<i64: 256, 256>}, {pipeline_mode = #tpu.pipeline_mode<synchronous>, transform_indices = @transform_6, window_bounds = array<i64: 256, 128>}, {pipeline_mode = #tpu.pipeline_mode<synchronous>, transform_indices = @transform_7, window_bounds = array<i64: 4, 256>}, {pipeline_mode = #tpu.pipeline_mode<synchronous>, transform_indices = @transform_8, window_bounds = array<i64: 1, 128>}, {transform_indices = @transform_9, window_bounds = array<i64: 1, 128, 128>}]} {
    %c0 = arith.constant 0 : index
    %c0_0 = arith.constant 0 : index
    %c0_1 = arith.constant 0 : index
    %0 = vector.load %arg1[%c0, %c0_0, %c0_1] : memref<1x128x128xbf16, #tpu.memory_space<vmem>>, vector<1x128x128xbf16>
    %1 = vector.shape_cast %0 : vector<1x128x128xbf16> to vector<128x128xbf16>
    %c0_2 = arith.constant 0 : index
    %c0_3 = arith.constant 0 : index
    %c0_4 = arith.constant 0 : index
    %2 = vector.load %arg2[%c0_2, %c0_3, %c0_4] : memref<1x128x128xbf16, #tpu.memory_space<vmem>>, vector<1x128x128xbf16>
    %3 = vector.shape_cast %2 : vector<1x128x128xbf16> to vector<128x128xbf16>
    %cst = arith.constant dense<0.000000e+00> : vector<128x128xf32>
    %4 = tpu.matmul %1, %3, %cst {dimension_numbers = #tpu.dot_dimension_numbers<[1], [0], [0], [1], [0, 0, 1, 1], [], []>} : vector<128x128xbf16>, vector<128x128xbf16>, vector<128x128xf32> -> vector<128x128xf32>
    %5 = arith.truncf %4 : vector<128x128xf32> to vector<128x128xbf16>
    %c0_5 = arith.constant 0 : index
    %c0_6 = arith.constant 0 : index
    %6 = vector.load %arg3[%c0_5, %c0_6] : memref<128x256xbf16, #tpu.memory_space<vmem>>, vector<128x256xbf16>
    %cst_7 = arith.constant dense<0.000000e+00> : vector<128x256xf32>
    %7 = tpu.matmul %5, %6, %cst_7 {dimension_numbers = #tpu.dot_dimension_numbers<[1], [0], [0], [1], [0, 0, 1, 1], [], []>} : vector<128x128xbf16>, vector<128x256xbf16>, vector<128x256xf32> -> vector<128x256xf32>
    %c0_8 = arith.constant 0 : index
    %c0_9 = arith.constant 0 : index
    %8 = vector.load %arg8[%c0_8, %c0_9] : memref<4x256xf32, #tpu.memory_space<vmem>>, vector<1x256xf32>
    %9 = vector.broadcast %8 : vector<1x256xf32> to vector<128x256xf32>
    %10 = arith.addf %7, %9 : vector<128x256xf32>
    %cst_10 = arith.constant 0.000000e+00 : f32
    %11 = vector.broadcast %cst_10 : f32 to vector<128x256xf32>
    %12 = arith.maximumf %10, %11 : vector<128x256xf32>
    %13 = arith.truncf %12 : vector<128x256xf32> to vector<128x256xbf16>
    %c0_11 = arith.constant 0 : index
    %c0_12 = arith.constant 0 : index
    %14 = vector.load %arg4[%c0_11, %c0_12] : memref<256x256xbf16, #tpu.memory_space<vmem>>, vector<256x256xbf16>
    %cst_13 = arith.constant dense<0.000000e+00> : vector<128x256xf32>
    %15 = tpu.matmul %13, %14, %cst_13 {dimension_numbers = #tpu.dot_dimension_numbers<[1], [0], [0], [1], [0, 0, 1, 1], [], []>} : vector<128x256xbf16>, vector<256x256xbf16>, vector<128x256xf32> -> vector<128x256xf32>
    %16 = arith.truncf %15 : vector<128x256xf32> to vector<128x256xbf16>
    %cst_14 = arith.constant dense<0.000000e+00> : vector<128x256xf32>
    %17 = tpu.matmul %1, %16, %cst_14 {dimension_numbers = #tpu.dot_dimension_numbers<[1], [0], [0], [1], [0, 0, 1, 1], [], []>} : vector<128x128xbf16>, vector<128x256xbf16>, vector<128x256xf32> -> vector<128x256xf32>
    %c1 = arith.constant 1 : index
    %c0_15 = arith.constant 0 : index
    %18 = vector.load %arg8[%c1, %c0_15] : memref<4x256xf32, #tpu.memory_space<vmem>>, vector<1x256xf32>
    %19 = vector.broadcast %18 : vector<1x256xf32> to vector<128x256xf32>
    %20 = arith.addf %17, %19 : vector<128x256xf32>
    %cst_16 = arith.constant 0.000000e+00 : f32
    %21 = vector.broadcast %cst_16 : f32 to vector<128x256xf32>
    %22 = arith.maximumf %20, %21 : vector<128x256xf32>
    %23 = arith.truncf %22 : vector<128x256xf32> to vector<128x256xbf16>
    %c0_17 = arith.constant 0 : index
    %c0_18 = arith.constant 0 : index
    %24 = vector.load %arg5[%c0_17, %c0_18] : memref<256x256xbf16, #tpu.memory_space<vmem>>, vector<256x256xbf16>
    %cst_19 = arith.constant dense<0.000000e+00> : vector<128x256xf32>
    %25 = tpu.matmul %23, %24, %cst_19 {dimension_numbers = #tpu.dot_dimension_numbers<[1], [0], [0], [1], [0, 0, 1, 1], [], []>} : vector<128x256xbf16>, vector<256x256xbf16>, vector<128x256xf32> -> vector<128x256xf32>
    %26 = arith.truncf %25 : vector<128x256xf32> to vector<128x256xbf16>
    %cst_20 = arith.constant dense<0.000000e+00> : vector<128x256xf32>
    %27 = tpu.matmul %1, %26, %cst_20 {dimension_numbers = #tpu.dot_dimension_numbers<[1], [0], [0], [1], [0, 0, 1, 1], [], []>} : vector<128x128xbf16>, vector<128x256xbf16>, vector<128x256xf32> -> vector<128x256xf32>
    %c2 = arith.constant 2 : index
    %c0_21 = arith.constant 0 : index
    %28 = vector.load %arg8[%c2, %c0_21] : memref<4x256xf32, #tpu.memory_space<vmem>>, vector<1x256xf32>
    %29 = vector.broadcast %28 : vector<1x256xf32> to vector<128x256xf32>
    %30 = arith.addf %27, %29 : vector<128x256xf32>
    %cst_22 = arith.constant 0.000000e+00 : f32
    %31 = vector.broadcast %cst_22 : f32 to vector<128x256xf32>
    %32 = arith.maximumf %30, %31 : vector<128x256xf32>
    %33 = arith.truncf %32 : vector<128x256xf32> to vector<128x256xbf16>
    %c0_23 = arith.constant 0 : index
    %c0_24 = arith.constant 0 : index
    %34 = vector.load %arg6[%c0_23, %c0_24] : memref<256x256xbf16, #tpu.memory_space<vmem>>, vector<256x256xbf16>
    %cst_25 = arith.constant dense<0.000000e+00> : vector<128x256xf32>
    %35 = tpu.matmul %33, %34, %cst_25 {dimension_numbers = #tpu.dot_dimension_numbers<[1], [0], [0], [1], [0, 0, 1, 1], [], []>} : vector<128x256xbf16>, vector<256x256xbf16>, vector<128x256xf32> -> vector<128x256xf32>
    %36 = arith.truncf %35 : vector<128x256xf32> to vector<128x256xbf16>
    %cst_26 = arith.constant dense<0.000000e+00> : vector<128x256xf32>
    %37 = tpu.matmul %1, %36, %cst_26 {dimension_numbers = #tpu.dot_dimension_numbers<[1], [0], [0], [1], [0, 0, 1, 1], [], []>} : vector<128x128xbf16>, vector<128x256xbf16>, vector<128x256xf32> -> vector<128x256xf32>
    %c3 = arith.constant 3 : index
    %c0_27 = arith.constant 0 : index
    %38 = vector.load %arg8[%c3, %c0_27] : memref<4x256xf32, #tpu.memory_space<vmem>>, vector<1x256xf32>
    %39 = vector.broadcast %38 : vector<1x256xf32> to vector<128x256xf32>
    %40 = arith.addf %37, %39 : vector<128x256xf32>
    %cst_28 = arith.constant 0.000000e+00 : f32
    %41 = vector.broadcast %cst_28 : f32 to vector<128x256xf32>
    %42 = arith.maximumf %40, %41 : vector<128x256xf32>
    %43 = arith.truncf %42 : vector<128x256xf32> to vector<128x256xbf16>
    %c0_29 = arith.constant 0 : index
    %c0_30 = arith.constant 0 : index
    %44 = vector.load %arg7[%c0_29, %c0_30] : memref<256x128xbf16, #tpu.memory_space<vmem>>, vector<256x128xbf16>
    %cst_31 = arith.constant dense<0.000000e+00> : vector<128x128xf32>
    %45 = tpu.matmul %43, %44, %cst_31 {dimension_numbers = #tpu.dot_dimension_numbers<[1], [0], [0], [1], [0, 0, 1, 1], [], []>} : vector<128x256xbf16>, vector<256x128xbf16>, vector<128x128xf32> -> vector<128x128xf32>
    %46 = arith.truncf %45 : vector<128x128xf32> to vector<128x128xbf16>
    %cst_32 = arith.constant dense<0.000000e+00> : vector<128x128xf32>
    %47 = tpu.matmul %1, %46, %cst_32 {dimension_numbers = #tpu.dot_dimension_numbers<[1], [0], [0], [1], [0, 0, 1, 1], [], []>} : vector<128x128xbf16>, vector<128x128xbf16>, vector<128x128xf32> -> vector<128x128xf32>
    %c0_33 = arith.constant 0 : index
    %c0_34 = arith.constant 0 : index
    %48 = vector.load %arg9[%c0_33, %c0_34] : memref<1x128xf32, #tpu.memory_space<vmem>>, vector<1x128xf32>
    %49 = vector.broadcast %48 : vector<1x128xf32> to vector<128x128xf32>
    %50 = arith.addf %47, %49 : vector<128x128xf32>
    %51 = tpu.iota {dimensions = array<i32: 1>} : vector<128x128xi32>
    %c32_i32 = arith.constant 32 : i32
    %52 = vector.broadcast %c32_i32 : i32 to vector<128x128xi32>
    %53 = arith.cmpi slt, %51, %52 : vector<128x128xi32>
    %cst_35 = arith.constant -1.000000e+30 : f32
    %54 = vector.broadcast %cst_35 : f32 to vector<128x128xf32>
    %55 = arith.select %53, %50, %54 : vector<128x128xi1>, vector<128x128xf32>
    %cst_36 = arith.constant dense<0xFF800000> : vector<128xf32>
    %56 = vector.multi_reduction <maximumf>, %55, %cst_36 [1] : vector<128x128xf32> to vector<128xf32>
    %57 = vector.shape_cast %56 : vector<128xf32> to vector<128x1xf32>
    %58 = vector.broadcast %57 : vector<128x1xf32> to vector<128x128xf32>
    %59 = arith.subf %55, %58 : vector<128x128xf32>
    %60 = math.exp %59 : vector<128x128xf32>
    %cst_37 = arith.constant dense<0.000000e+00> : vector<128xf32>
    %61 = vector.multi_reduction <add>, %60, %cst_37 [1] : vector<128x128xf32> to vector<128xf32>
    %62 = vector.shape_cast %61 : vector<128xf32> to vector<128x1xf32>
    %63 = vector.broadcast %57 : vector<128x1xf32> to vector<128x128xf32>
    %64 = arith.subf %55, %63 : vector<128x128xf32>
    %65 = math.log %62 : vector<128x1xf32>
    %66 = vector.broadcast %65 : vector<128x1xf32> to vector<128x128xf32>
    %67 = arith.subf %64, %66 : vector<128x128xf32>
    %c0_38 = arith.constant 0 : index
    %c0_39 = arith.constant 0 : index
    %c0_40 = arith.constant 0 : index
    %68 = vector.load %arg10[%c0_38, %c0_39, %c0_40] : memref<1x128x128xf32, #tpu.memory_space<vmem>>, vector<1x128x128xf32>
    %69 = vector.shape_cast %68 : vector<1x128x128xf32> to vector<128x128xf32>
    %70 = vector.shape_cast %67 : vector<128x128xf32> to vector<1x128x128xf32>
    tpu.vector_store %arg10[%c0_38, %c0_39, %c0_40], %70 {strides = array<i32>} : memref<1x128x128xf32, #tpu.memory_space<vmem>>, vector<1x128x128xf32>,
    return
  }
  func.func @transform_0(%arg0: i32) -> (i32, i32, i32) {
    %c0_i32 = arith.constant 0 : i32
    %c0_i32_0 = arith.constant 0 : i32
    %c0_i32_1 = arith.constant 0 : i32
    return %arg0, %c0_i32, %c0_i32_0 : i32, i32, i32
  }
  func.func @transform_1(%arg0: i32) -> (i32, i32, i32) {
    %c0_i32 = arith.constant 0 : i32
    %c0_i32_0 = arith.constant 0 : i32
    %c0_i32_1 = arith.constant 0 : i32
    return %arg0, %c0_i32, %c0_i32_0 : i32, i32, i32
  }
  func.func @transform_2(%arg0: i32) -> (i32, i32) {
    %c0_i32 = arith.constant 0 : i32
    %c0_i32_0 = arith.constant 0 : i32
    %c0_i32_1 = arith.constant 0 : i32
    return %c0_i32, %c0_i32_0 : i32, i32
  }
  func.func @transform_3(%arg0: i32) -> (i32, i32) {
    %c0_i32 = arith.constant 0 : i32
    %c0_i32_0 = arith.constant 0 : i32
    %c0_i32_1 = arith.constant 0 : i32
    return %c0_i32, %c0_i32_0 : i32, i32
  }
  func.func @transform_4(%arg0: i32) -> (i32, i32) {
    %c0_i32 = arith.constant 0 : i32
    %c0_i32_0 = arith.constant 0 : i32
    %c0_i32_1 = arith.constant 0 : i32
    return %c0_i32, %c0_i32_0 : i32, i32
  }
  func.func @transform_5(%arg0: i32) -> (i32, i32) {
    %c0_i32 = arith.constant 0 : i32
    %c0_i32_0 = arith.constant 0 : i32
    %c0_i32_1 = arith.constant 0 : i32
    return %c0_i32, %c0_i32_0 : i32, i32
  }
  func.func @transform_6(%arg0: i32) -> (i32, i32) {
    %c0_i32 = arith.constant 0 : i32
    %c0_i32_0 = arith.constant 0 : i32
    %c0_i32_1 = arith.constant 0 : i32
    return %c0_i32, %c0_i32_0 : i32, i32
  }
  func.func @transform_7(%arg0: i32) -> (i32, i32) {
    %c0_i32 = arith.constant 0 : i32
    %c0_i32_0 = arith.constant 0 : i32
    %c0_i32_1 = arith.constant 0 : i32
    return %c0_i32, %c0_i32_0 : i32, i32
  }
  func.func @transform_8(%arg0: i32) -> (i32, i32) {
    %c0_i32 = arith.constant 0 : i32
    %c0_i32_0 = arith.constant 0 : i32
    %c0_i32_1 = arith.constant 0 : i32
    return %c0_i32, %c0_i32_0 : i32, i32
  }
  func.func @transform_9(%arg0: i32) -> (i32, i32, i32) {
    %c0_i32 = arith.constant 0 : i32
    %c0_i32_0 = arith.constant 0 : i32
    %c0_i32_1 = arith.constant 0 : i32
    return %arg0, %c0_i32, %c0_i32_0 : i32, i32, i32
  }
}

</mosaic_0001>

<bundles_post_ra>
// kernel: _lambda_.1
= control target key start
LH: loop header
LB: loop body
LE: loop exit
PB: predicated region body
PF: predicated region fallthrough
CT: control target
= control target key end

     0   :  { %s3605_s30 = smov 0   ;;  %s4455_s0 = inlined_call_operand.vmem [shape: bf16[4,128,128], index: 0, kind: input, shape index: {}]   ;;  %s4456_s1 = inlined_call_operand.vmem [shape: bf16[4,128,128], index: 1, kind: input, shape index: {}]   ;;  %s4457_s2 = inlined_call_operand.vmem [shape: bf16[128,256], index: 2, kind: input, shape index: {}]   ;;  %s4458_s3 = inlined_call_operand.vmem [shape: bf16[256,256], index: 3, kind: input, shape index: {}]   ;;  %s4459_s4 = inlined_call_operand.vmem [shape: bf16[256,256], index: 4, kind: input, shape index: {}]   ;;  %s4460_s5 = inlined_call_operand.vmem [shape: bf16[256,256], index: 5, kind: input, shape index: {}]   ;;  %s4461_s6 = inlined_call_operand.vmem [shape: bf16[256,128], index: 6, kind: input, shape index: {}]   ;;  %s4462_s7 = inlined_call_operand.vmem [shape: f32[4,256], index: 7, kind: input, shape index: {}]   ;;  %s4463_s8 = inlined_call_operand.vmem [shape: f32[1,128], index: 8, kind: input, shape index: {}]   ;;  %s4464_s9 = inlined_call_operand.vmem [shape: f32[4,128,128], index: 9, kind: output, shape index: {}]  }
   0x1 LB: > { %s2940_s10 = sadd.s32 4294967295, %s3552_s30   ;;  %p2944_p0 = scmp.ge.s32.totalorder %s3552_s30, 1  ;;  %s3552_s30 = sphi %s3605_s30, %s19_s30  }
   0x2   : > { %p297_p1 = scmp.lt.s32.totalorder %s3552_s30, 5 }
   0x4   : > { %p298_p2 = pnand %p2944_p0, %p297_p1 }
   0x5   : > { %p338_p3 = scmp.lt.s32.totalorder (!%p298_p2), %s2940_s10, 3  ;;  %v3289_v0 = vld [vmem:[%s4457_s2 + $0x4] ss:$8 sps:$4 sm:$0xff] (!%p298_p2)   ;;  %v3291_v1 = vld [vmem:[%s4457_s2] ss:$8 sps:$4 sm:$0xff] (!%p298_p2)   ;;  %v3554_v32 = vmov (!%p298_p2), 0  }
   0x6   : > { %301 = sbr.rel (%p298_p2) target bundleno = 2826 (0xb0a), region = 56  ;;  %695 = vmatprep.subr.bf16.mxu1 (!%p298_p2), %v3289_v0  ;;  %v3292_v2 = vld [vmem:[%s4457_s2 + $0x14] ss:$8 sps:$4 sm:$0xff] (!%p298_p2)   ;;  %v3294_v3 = vld [vmem:[%s4457_s2 + $0x10] ss:$8 sps:$4 sm:$0xff] (!%p298_p2)   ;;  %727 = vmatprep.mubr.bf16.mxu1 (!%p298_p2), %v3554_v32 }
   0x7   : > { %696 = vmatpush1.bf16.msra.mxu1 (!%p298_p2), %v3291_v1  ;;  %v3295_v4 = vld [vmem:[%s4457_s2 + $0x24] ss:$8 sps:$4 sm:$0xff] (!%p298_p2)   ;;  %v3297_v5 = vld [vmem:[%s4457_s2 + $0x20] ss:$8 sps:$4 sm:$0xff] (!%p298_p2)   ;;  %v3298_v8 = vld [vmem:[%s4457_s2 + $0x34] ss:$8 sps:$4 sm:$0xff] (!%p298_p2)  }
   0x8   : > { %697 = vmatprep.subr.bf16.mxu1 (!%p298_p2), %v3292_v2  ;;  %v3300_v10 = vld [vmem:[%s4457_s2 + $0x30] ss:$8 sps:$4 sm:$0xff] (!%p298_p2)   ;;  %v3301_v15 = vld [vmem:[%s4457_s2 + $0x44] ss:$8 sps:$4 sm:$0xff] (!%p298_p2)   ;;  %v3303_v16 = vld [vmem:[%s4457_s2 + $0x40] ss:$8 sps:$4 sm:$0xff] (!%p298_p2)  }
   0x9   : > { %v3304_v17 = vld [vmem:[%s4457_s2 + $0x54] ss:$8 sps:$4 sm:$0xff] (!%p298_p2)   ;;  %v3306_v19 = vld [vmem:[%s4457_s2 + $0x50] ss:$8 sps:$4 sm:$0xff] (!%p298_p2)   ;;  %v3307_v20 = vld [vmem:[%s4457_s2 + $0x64] ss:$8 sps:$4 sm:$0xff] (!%p298_p2)  }
   0xa   : > { %v3309_v21 = vld [vmem:[%s4457_s2 + $0x60] ss:$8 sps:$4 sm:$0xff] (!%p298_p2)   ;;  %v3310_v30 = vld [vmem:[%s4457_s2 + $0x74] ss:$8 sps:$4 sm:$0xff] (!%p298_p2)   ;;  %v3312_v31 = vld [vmem:[%s4457_s2 + $0x70] ss:$8 sps:$4 sm:$0xff] (!%p298_p2)  }
   0xb   : > { %698 = vmatpush1.bf16.msra.mxu1 (!%p298_p2), %v3294_v3  ;;  %v3313_v33 = vld [vmem:[%s4458_s3] ss:$8 sps:$4 sm:$0xff] (!%p298_p2)   ;;  %v3315_v34 = vld [vmem:[%s4458_s3 + $0x4] ss:$8 sps:$4 sm:$0xff] (!%p298_p2)   ;;  %v3318_v35 = vld [vmem:[%s4458_s3 + $0x14] ss:$8 sps:$4 sm:$0xff] (!%p298_p2)  }
   0xc   : > { %699 = vmatprep.subr.bf16.mxu1 (!%p298_p2), %v3295_v4  ;;  %v3316_v36 = vld [vmem:[%s4458_s3 + $0x10] ss:$8 sps:$4 sm:$0xff] (!%p298_p2)   ;;  %v3321_v37 = vld [vmem:[%s4458_s3 + $0x24] ss:$8 sps:$4 sm:$0xff] (!%p298_p2)   ;;  %v3319_v38 = vld [vmem:[%s4458_s3 + $0x20] ss:$8 sps:$4 sm:$0xff] (!%p298_p2)  }
   0xd   : > { %s4466_s10 = smov (!%p338_p3, %s2940_s10), 3  ;;  %v3324_v39 = vld [vmem:[%s4458_s3 + $0x34] ss:$8 sps:$4 sm:$0xff]   ;;  %v3322_v40 = vld [vmem:[%s4458_s3 + $0x30] ss:$8 sps:$4 sm:$0xff]  }
   0xe   : > { %s3101_s19 = sshll.u32 %s4466_s10, 6  ;;  %v3327_v41 = vld [vmem:[%s4458_s3 + $0x44] ss:$8 sps:$4 sm:$0xff]   ;;  %v3325_v42 = vld [vmem:[%s4458_s3 + $0x40] ss:$8 sps:$4 sm:$0xff]   ;;  %s3103_s11 = sshll.u32 %s4466_s10, 7 }
   0xf   : > { %s3634_s24 = scalar_lea.vmem %s4456_s1, %s3101_s19  ;;  %s3648_s12 = scalar_lea.vmem %s4455_s0, %s3101_s19  ;;  %700 = vmatpush1.bf16.msra.mxu1 %v3297_v5  ;;  %v3330_v43 = vld [vmem:[%s4458_s3 + $0x54] ss:$8 sps:$4 sm:$0xff]   ;;  %v3328_v44 = vld [vmem:[%s4458_s3 + $0x50] ss:$8 sps:$4 sm:$0xff]   ;;  %v3333_v45 = vld [vmem:[%s4458_s3 + $0x64] ss:$8 sps:$4 sm:$0xff]  }
  0x10   : > { %v3273_v6 = vld [vmem:[%s3634_s24] sm:$0xff]   ;;  %v3274_v7 = vld [vmem:[%s3634_s24 + $0x8] sm:$0xff]   ;;  %v3275_v9 = vld [vmem:[%s3634_s24 + $0x10] sm:$0xff]   ;;  %701 = vmatprep.subr.bf16.mxu1 %v3298_v8  ;;  %s4418_s15 = scalar_lea.vmem %s4464_s9, %s3103_s11 }
  0x11   : > { %3200 = vmatprep.subr.bf16.mxu0 %v3273_v6  ;;  %v3276_v11 = vld [vmem:[%s3634_s24 + $0x18] sm:$0xff]   ;;  %v3281_v12 = vld [vmem:[%s3648_s12] sm:$0xff]   ;;  %v3278_v14 = vld [vmem:[%s3634_s24 + $0x28] sm:$0xff]  }
  0x12   : > { %3201 = vmatpush3.bf16.msra.mxu0 %v3273_v6  ;;  %3216 = vmatprep.mubr.bf16.mxu0 %v3281_v12  ;;  %v3277_v13 = vld [vmem:[%s3634_s24 + $0x20] sm:$0xff]   ;;  %v3279_v18 = vld [vmem:[%s3634_s24 + $0x30] sm:$0xff]   ;;  %v3280_v22 = vld [vmem:[%s3634_s24 + $0x38] sm:$0xff]  }
  0x13   : > { %3202 = vmatprep.subr.bf16.mxu0 %v3274_v7  ;;  %702 = vmatpush1.bf16.msra.mxu1 %v3300_v10  ;;  %v3678_v23 = vld [vmem:[%s3648_s12 + $0x8] sm:$0xff]   ;;  %v3681_v24 = vld [vmem:[%s3648_s12 + $0x10] sm:$0xff]   ;;  %v3686_v25 = vld [vmem:[%s3648_s12 + $0x18] sm:$0xff]  }
  0x14   : > { %703 = vmatprep.subr.bf16.mxu1 %v3301_v15  ;;  %v3689_v26 = vld [vmem:[%s3648_s12 + $0x20] sm:$0xff]   ;;  %v3694_v27 = vld [vmem:[%s3648_s12 + $0x28] sm:$0xff]   ;;  %v3697_v28 = vld [vmem:[%s3648_s12 + $0x30] sm:$0xff]  }
  0x15   : > { %v3702_v29 = vld [vmem:[%s3648_s12 + $0x38] sm:$0xff]   ;;  %v3331_v46 = vld [vmem:[%s4458_s3 + $0x60] ss:$8 sps:$4 sm:$0xff]   ;;  %v3339_v49 = vld [vmem:[%s4458_s3 + $0x84] ss:$8 sps:$4 sm:$0xff]  }
  0x16   : > { %3203 = vmatpush3.bf16.msra.mxu0 %v3274_v7  ;;  %v3336_v47 = vld [vmem:[%s4458_s3 + $0x74] ss:$8 sps:$4 sm:$0xff]   ;;  %v3334_v48 = vld [vmem:[%s4458_s3 + $0x70] ss:$8 sps:$4 sm:$0xff]   ;;  %v3337_v50 = vld [vmem:[%s4458_s3 + $0x80] ss:$8 sps:$4 sm:$0xff]  }
  0x17   : > { %3204 = vmatprep.subr.bf16.mxu0 %v3275_v9  ;;  %704 = vmatpush1.bf16.msra.mxu1 %v3303_v16  ;;  %v3342_v51 = vld [vmem:[%s4458_s3 + $0x94] ss:$8 sps:$4 sm:$0xff]   ;;  %v3340_v52 = vld [vmem:[%s4458_s3 + $0x90] ss:$8 sps:$4 sm:$0xff]   ;;  %v3345_v53 = vld [vmem:[%s4458_s3 + $0xa4] ss:$8 sps:$4 sm:$0xff]  }
  0x18   : > { %705 = vmatprep.subr.bf16.mxu1 %v3304_v17  ;;  %v3343_v54 = vld [vmem:[%s4458_s3 + $0xa0] ss:$8 sps:$4 sm:$0xff]   ;;  %v3348_v55 = vld [vmem:[%s4458_s3 + $0xb4] ss:$8 sps:$4 sm:$0xff]   ;;  %v3346_v56 = vld [vmem:[%s4458_s3 + $0xb0] ss:$8 sps:$4 sm:$0xff]  }
  0x19   : > { %v3351_v57 = vld [vmem:[%s4458_s3 + $0xc4] ss:$8 sps:$4 sm:$0xff]   ;;  %v3349_v58 = vld [vmem:[%s4458_s3 + $0xc0] ss:$8 sps:$4 sm:$0xff]   ;;  %v3354_v59 = vld [vmem:[%s4458_s3 + $0xd4] ss:$8 sps:$4 sm:$0xff]  }
  0x1a   : > { %3205 = vmatpush3.bf16.msra.mxu0 %v3275_v9  ;;  %v3352_v60 = vld [vmem:[%s4458_s3 + $0xd0] ss:$8 sps:$4 sm:$0xff]  }
  0x1b   : > { %3206 = vmatprep.subr.bf16.mxu0 %v3276_v11  ;;  %706 = vmatpush1.bf16.msra.mxu1 %v3306_v19 }
  0x1c   : > { %707 = vmatprep.subr.bf16.mxu1 %v3307_v20 }
  0x1e   : > { %3207 = vmatpush3.bf16.msra.mxu0 %v3276_v11 }
  0x1f   : > { %3208 = vmatprep.subr.bf16.mxu0 %v3277_v13  ;;  %708 = vmatpush1.bf16.msra.mxu1 %v3309_v21  ;;  %v3357_v21 = vld [vmem:[%s4458_s3 + $0xe4] ss:$8 sps:$4 sm:$0xff]  }
  0x20   : > { %709 = vmatprep.subr.bf16.mxu1 %v3310_v30  ;;  %v3360_v30 = vld [vmem:[%s4458_s3 + $0xf4] ss:$8 sps:$4 sm:$0xff]  }
  0x22   : > { %3209 = vmatpush3.bf16.msra.mxu0 %v3277_v13 }
  0x23   : > { %3210 = vmatprep.subr.bf16.mxu0 %v3278_v14  ;;  %710 = vmatpush1.bf16.msra.mxu1 %v3312_v31  ;;  %v3358_v31 = vld [vmem:[%s4458_s3 + $0xf0] ss:$8 sps:$4 sm:$0xff]  }
  0x26   : > { %3211 = vmatpush3.bf16.msra.mxu0 %v3278_v14 }
  0x27   : > { %3212 = vmatprep.subr.bf16.mxu0 %v3279_v18 }
  0x2a   : > { %3213 = vmatpush3.bf16.msra.mxu0 %v3279_v18 }
  0x2b   : > { %3214 = vmatprep.subr.bf16.mxu0 %v3280_v22 }
  0x2e   : > { %3215 = vmatpush3.bf16.msra.mxu0 %v3280_v22  ;;  %v3355_v22 = vld [vmem:[%s4458_s3 + $0xe0] ss:$8 sps:$4 sm:$0xff]  }
  0x2f   : > { %1048 = vmatprep.subr.bf16.mxu0 %v3315_v34 }
  0x31   : > { %3217 = vmatmul.mubr.bf16.vlgmr.msra.gmra.mrb[0].mxu0 %v3678_v23 }
  0x32   : > { %3220 = vmatprep.mubr.bf16.mxu0 %v3681_v24  ;;  %1049 = vmatpush1.bf16.msra.mxu0 %v3313_v33  ;;  %v605_v33 = vlaneseq }
  0x33   : > { %1050 = vmatprep.subr.bf16.mxu0 %v3318_v35 }
  0x34   : > { %v606_v34 = vshrl.u32 %v605_v33, 7 }
  0x36   : > { %1051 = vmatpush1.bf16.msra.mxu0 %v3316_v36  ;;  %v3817_v35 = vsub.s32 0, %v606_v34  ;;  %v603_v36 = vld [vmem:[%s4462_s7] ss:$4 sm:$0x3] }
  0x37   : > { %1052 = vmatprep.subr.bf16.mxu0 %v3321_v37  ;;  %v3822_v37 = vsub.s32 1, %v606_v34 }
  0x39   : > { %3221 = vmatmul.mubr.bf16.gmra.mrb[4].mxu0 %v3686_v25 }
  0x3a   : > { %3224 = vmatprep.mubr.bf16.mxu0 %v3689_v26  ;;  %1053 = vmatpush1.bf16.msra.mxu0 %v3319_v38  ;;  %v3825_v38 = vrot.slane %v603_v36, %v3817_v35 }
  0x3b   : > { %1054 = vmatprep.subr.bf16.mxu0 %v3324_v39  ;;  %v3828_v39 = vrot.slane %v603_v36, %v3822_v37 }
  0x3e   : > { %1055 = vmatpush1.bf16.msra.mxu0 %v3322_v40 }
  0x3f   : > { %1056 = vmatprep.subr.bf16.mxu0 %v3327_v41 }
  0x41   : > { %3225 = vmatmul.mubr.bf16.gmra.mrb[8].mxu0 %v3694_v27 }
  0x42   : > { %3228 = vmatprep.mubr.bf16.mxu0 %v3697_v28  ;;  %1057 = vmatpush1.bf16.msra.mxu0 %v3325_v42 }
  0x43   : > { %1058 = vmatprep.subr.bf16.mxu0 %v3330_v43 }
  0x46   : > { %1059 = vmatpush1.bf16.msra.mxu0 %v3328_v44 }
  0x47   : > { %1060 = vmatprep.subr.bf16.mxu0 %v3333_v45 }
  0x49   : > { %3229 = vmatmul.mubr.bf16.gmra.mrb[12].mxu0 %v3702_v29 }
  0x4a   : > { %1061 = vmatpush1.bf16.msra.mxu0 %v3331_v46 }
  0x4b   : > { %1062 = vmatprep.subr.bf16.mxu0 %v3336_v47 }
  0x4e   : > { %1063 = vmatpush1.bf16.msra.mxu0 %v3334_v48 }
  0x4f   : > { %1064 = vmatprep.subr.bf16.mxu0 %v3339_v49 }
  0x52   : > { %1065 = vmatpush1.bf16.msra.mxu0 %v3337_v50 }
  0x53   : > { %1066 = vmatprep.subr.bf16.mxu0 %v3342_v51 }
  0x56   : > { %1067 = vmatpush1.bf16.msra.mxu0 %v3340_v52 }
  0x57   : > { %1068 = vmatprep.subr.bf16.mxu0 %v3345_v53 }
  0x5a   : > { %1069 = vmatpush1.bf16.msra.mxu0 %v3343_v54 }
  0x5b   : > { %1070 = vmatprep.subr.bf16.mxu0 %v3348_v55 }
  0x5e   : > { %1071 = vmatpush1.bf16.msra.mxu0 %v3346_v56 }
  0x5f   : > { %1072 = vmatprep.subr.bf16.mxu0 %v3351_v57 }
  0x62   : > { %1073 = vmatpush1.bf16.msra.mxu0 %v3349_v58 }
  0x63   : > { %1074 = vmatprep.subr.bf16.mxu0 %v3354_v59 }
  0x66   : > { %1075 = vmatpush1.bf16.msra.mxu0 %v3352_v60 }
  0x67   : > { %1076 = vmatprep.subr.bf16.mxu0 %v3357_v21 }
  0x6a   : > { %1077 = vmatpush1.bf16.msra.mxu0 %v3355_v22 }
  0x6b   : > { %1078 = vmatprep.subr.bf16.mxu0 %v3360_v30 }
  0x6e   : > { %1079 = vmatpush1.bf16.msra.mxu0 %v3358_v31 }
 0x104   : > { %v3218_v61 = vpop.f32.mrb[0].mxu0 }
 0x105   : > { %v516_v62 = vpop.f32.mrb[1].mxu0 }
 0x106   : > { %v3219_v63 = vpop.f32.mrb[2].mxu0 }
 0x107   : > { %v580_v0 = vpack.c.bf16 %v3219_v63, %v3218_v61  ;;  %v519_v1 = vpop.f32.mrb[3].mxu0 }
 0x108   : > { %v579_v2 = vpack.c.bf16 %v519_v1, %v516_v62 }
 0x10a   : > { %728 = vmatmul.mubr.bf16.vlgmr.msra.gmra.mrb[0].mxu1 %v579_v2 }
 0x10b   : > { %737 = vmatprep.mubr.bf16.mxu1 %v3554_v32 }
 0x10c   : > { %v3222_v3 = vpop.f32.mrb[4].mxu0 }
 0x10d   : > { %v532_v4 = vpop.f32.mrb[5].mxu0 }
 0x10e   : > { %v3223_v5 = vpop.f32.mrb[6].mxu0 }
 0x10f   : > { %v582_v6 = vpack.c.bf16 %v3223_v5, %v3222_v3  ;;  %v535_v7 = vpop.f32.mrb[7].mxu0 }
 0x110   : > { %v581_v8 = vpack.c.bf16 %v535_v7, %v532_v4 }
 0x112   : > { %738 = vmatmul.mubr.bf16.gmra.mrb[4].mxu1 %v580_v0 }
 0x113   : > { %747 = vmatprep.mubr.bf16.mxu1 %v3554_v32 }
 0x114   : > { %v3226_v9 = vpop.f32.mrb[8].mxu0 }
 0x115   : > { %v548_v10 = vpop.f32.mrb[9].mxu0 }
 0x116   : > { %v3227_v11 = vpop.f32.mrb[10].mxu0 }
 0x117   : > { %v584_v12 = vpack.c.bf16 %v3227_v11, %v3226_v9  ;;  %v551_v13 = vpop.f32.mrb[11].mxu0 }
 0x118   : > { %v583_v14 = vpack.c.bf16 %v551_v13, %v548_v10 }
 0x11a   : > { %748 = vmatmul.mubr.bf16.gmra.mrb[8].mxu1 %v581_v8 }
 0x11b   : > { %757 = vmatprep.mubr.bf16.mxu1 %v3554_v32 }
 0x11c   : > { %v3230_v15 = vpop.f32.mrb[12].mxu0 }
 0x11d   : > { %v564_v16 = vpop.f32.mrb[13].mxu0 }
 0x11e   : > { %v3231_v17 = vpop.f32.mrb[14].mxu0 }
 0x11f   : > { %v586_v18 = vpack.c.bf16 %v3231_v17, %v3230_v15  ;;  %v567_v19 = vpop.f32.mrb[15].mxu0 }
 0x120   : > { %v585_v20 = vpack.c.bf16 %v567_v19, %v564_v16 }
 0x122   : > { %758 = vmatmul.mubr.bf16.gmra.mrb[12].mxu1 %v582_v6 }
 0x123   : > { %767 = vmatprep.mubr.bf16.mxu1 %v3554_v32 }
 0x12a   : > { %768 = vmatmul.mubr.bf16.gmra.mrb[16].mxu1 %v583_v14 }
 0x12b   : > { %777 = vmatprep.mubr.bf16.mxu1 %v3554_v32 }
 0x132   : > { %778 = vmatmul.mubr.bf16.gmra.mrb[20].mxu1 %v584_v12 }
 0x133   : > { %787 = vmatprep.mubr.bf16.mxu1 %v3554_v32 }
 0x13a   : > { %788 = vmatmul.mubr.bf16.gmra.mrb[24].mxu1 %v585_v20 }
 0x13b   : > { %797 = vmatprep.mubr.bf16.mxu1 %v3554_v32 }
 0x142   : > { %798 = vmatmul.mubr.bf16.gmra.mrb[28].mxu1 %v586_v18 }
 0x143   : > { %1222 = vmatprep.mubr.bf16.mxu1 %v3554_v32 }
 0x1dd   : > { %v729_v40 = vpop.f32.mrb[0].mxu1 }
 0x1de   : > { %v730_v41 = vadd.f32 %v729_v40, %v3825_v38  ;;  %v731_v42 = vpop.f32.mrb[1].mxu1 }
 0x1df   : > { %v732_v43 = vadd.f32 %v731_v42, %v3828_v39  ;;  %v733_v44 = vpop.f32.mrb[2].mxu1 }
 0x1e0   : > { %v734_v45 = vadd.f32 %v733_v44, %v3825_v38  ;;  %v735_v46 = vpop.f32.mrb[3].mxu1  ;;  %v808_v48 = vmax.f32 %v730_v41, 0.0 }
 0x1e1   : > { %v736_v47 = vadd.f32 %v735_v46, %v3828_v39  ;;  %v809_v50 = vmax.f32 %v732_v43, 0.0 }
 0x1e2   : > { %v810_v49 = vmax.f32 %v734_v45, 0.0 }
 0x1e3   : > { %v811_v51 = vmax.f32 %v736_v47, 0.0 }
 0x1e4   : > { %v840_v52 = vpack.c.bf16 %v810_v49, %v808_v48 }
 0x1e5   : > { %v841_v53 = vpack.c.bf16 %v811_v51, %v809_v50  ;;  %v739_v54 = vpop.f32.mrb[4].mxu1 }
 0x1e6   : > { %v740_v55 = vadd.f32 %v739_v54, %v3825_v38  ;;  %v741_v56 = vpop.f32.mrb[5].mxu1 }
 0x1e7   : > { %v742_v57 = vadd.f32 %v741_v56, %v3828_v39  ;;  %v743_v58 = vpop.f32.mrb[6].mxu1  ;;  %1080 = vmatprep.mubr.bf16.mxu0 %v841_v53 }
 0x1e8   : > { %v744_v59 = vadd.f32 %v743_v58, %v3825_v38  ;;  %v745_v60 = vpop.f32.mrb[7].mxu1  ;;  %1081 = vmatmul.mubr.bf16.vlgmr.msra.gmra.mrb[16].mxu0 %v840_v52  ;;  %v812_v62 = vmax.f32 %v740_v55, 0.0 }
 0x1e9   : > { %v746_v61 = vadd.f32 %v745_v60, %v3828_v39  ;;  %v813_v0 = vmax.f32 %v742_v57, 0.0 }
 0x1ea   : > { %v814_v63 = vmax.f32 %v744_v59, 0.0 }
 0x1eb   : > { %v815_v1 = vmax.f32 %v746_v61, 0.0 }
 0x1ec   : > { %v842_v2 = vpack.c.bf16 %v814_v63, %v812_v62 }
 0x1ed   : > { %v843_v3 = vpack.c.bf16 %v815_v1, %v813_v0  ;;  %v749_v4 = vpop.f32.mrb[8].mxu1 }
 0x1ee   : > { %v750_v5 = vadd.f32 %v749_v4, %v3825_v38  ;;  %v751_v6 = vpop.f32.mrb[9].mxu1 }
 0x1ef   : > { %v752_v7 = vadd.f32 %v751_v6, %v3828_v39  ;;  %v753_v8 = vpop.f32.mrb[10].mxu1  ;;  %1090 = vmatprep.mubr.bf16.mxu0 %v843_v3 }
 0x1f0   : > { %v754_v9 = vadd.f32 %v753_v8, %v3825_v38  ;;  %v755_v10 = vpop.f32.mrb[11].mxu1  ;;  %1091 = vmatmul.mubr.bf16.gmra.mrb[20].mxu0 %v842_v2  ;;  %v816_v12 = vmax.f32 %v750_v5, 0.0 }
 0x1f1   : > { %v756_v11 = vadd.f32 %v755_v10, %v3828_v39  ;;  %v817_v14 = vmax.f32 %v752_v7, 0.0 }
 0x1f2   : > { %v818_v13 = vmax.f32 %v754_v9, 0.0 }
 0x1f3   : > { %v819_v15 = vmax.f32 %v756_v11, 0.0 }
 0x1f4   : > { %v844_v16 = vpack.c.bf16 %v818_v13, %v816_v12 }
 0x1f5   : > { %v845_v17 = vpack.c.bf16 %v819_v15, %v817_v14  ;;  %v759_v18 = vpop.f32.mrb[12].mxu1 }
 0x1f6   : > { %v760_v19 = vadd.f32 %v759_v18, %v3825_v38  ;;  %v761_v20 = vpop.f32.mrb[13].mxu1 }
 0x1f7   : > { %v762_v21 = vadd.f32 %v761_v20, %v3828_v39  ;;  %v763_v22 = vpop.f32.mrb[14].mxu1  ;;  %1100 = vmatprep.mubr.bf16.mxu0 %v845_v17 }
 0x1f8   : > { %v764_v30 = vadd.f32 %v763_v22, %v3825_v38  ;;  %v765_v31 = vpop.f32.mrb[15].mxu1  ;;  %1101 = vmatmul.mubr.bf16.gmra.mrb[24].mxu0 %v844_v16  ;;  %v820_v36 = vmax.f32 %v760_v19, 0.0 }
 0x1f9   : > { %v766_v34 = vadd.f32 %v765_v31, %v3828_v39  ;;  %v821_v41 = vmax.f32 %v762_v21, 0.0 }
 0x1fa   : > { %v822_v40 = vmax.f32 %v764_v30, 0.0 }
 0x1fb   : > { %v823_v42 = vmax.f32 %v766_v34, 0.0 }
 0x1fc   : > { %v846_v43 = vpack.c.bf16 %v822_v40, %v820_v36 }
 0x1fd   : > { %v847_v44 = vpack.c.bf16 %v823_v42, %v821_v41  ;;  %v769_v45 = vpop.f32.mrb[16].mxu1 }
 0x1fe   : > { %v770_v46 = vadd.f32 %v769_v45, %v3825_v38  ;;  %v771_v47 = vpop.f32.mrb[17].mxu1 }
 0x1ff   : > { %v772_v48 = vadd.f32 %v771_v47, %v3828_v39  ;;  %v773_v49 = vpop.f32.mrb[18].mxu1  ;;  %1110 = vmatprep.mubr.bf16.mxu0 %v847_v44 }
 0x200   : > { %v774_v50 = vadd.f32 %v773_v49, %v3825_v38  ;;  %v775_v51 = vpop.f32.mrb[19].mxu1  ;;  %1111 = vmatmul.mubr.bf16.gmra.mrb[28].mxu0 %v846_v43  ;;  %v824_v53 = vmax.f32 %v770_v46, 0.0 }
 0x201   : > { %v776_v52 = vadd.f32 %v775_v51, %v3828_v39  ;;  %v825_v55 = vmax.f32 %v772_v48, 0.0  ;;  %v3364_v51 = vld [vmem:[%s4459_s4 + $0x10] ss:$8 sps:$4 sm:$0xff]  }
 0x202   : > { %v826_v54 = vmax.f32 %v774_v50, 0.0  ;;  %v3361_v50 = vld [vmem:[%s4459_s4] ss:$8 sps:$4 sm:$0xff]  }
 0x203   : > { %v827_v56 = vmax.f32 %v776_v52, 0.0  ;;  %v3369_v52 = vld [vmem:[%s4459_s4 + $0x24] ss:$8 sps:$4 sm:$0xff]  }
 0x204   : > { %v848_v57 = vpack.c.bf16 %v826_v54, %v824_v53 }
 0x205   : > { %v849_v58 = vpack.c.bf16 %v827_v56, %v825_v55  ;;  %v779_v59 = vpop.f32.mrb[20].mxu1  ;;  %v3367_v55 = vld [vmem:[%s4459_s4 + $0x20] ss:$8 sps:$4 sm:$0xff]  }
 0x206   : > { %v780_v60 = vadd.f32 %v779_v59, %v3825_v38  ;;  %v781_v61 = vpop.f32.mrb[21].mxu1 }
 0x207   : > { %v782_v62 = vadd.f32 %v781_v61, %v3828_v39  ;;  %v783_v63 = vpop.f32.mrb[22].mxu1  ;;  %1120 = vmatprep.mubr.bf16.mxu0 %v849_v58  ;;  %v3370_v61 = vld [vmem:[%s4459_s4 + $0x30] ss:$8 sps:$4 sm:$0xff]  }
 0x208   : > { %v784_v0 = vadd.f32 %v783_v63, %v3825_v38  ;;  %v785_v1 = vpop.f32.mrb[23].mxu1  ;;  %1121 = vmatmul.mubr.bf16.gmra.mrb[32].mxu0 %v848_v57  ;;  %v828_v3 = vmax.f32 %v780_v60, 0.0  ;;  %v3372_v57 = vld [vmem:[%s4459_s4 + $0x34] ss:$8 sps:$4 sm:$0xff]  }
 0x209   : > { %v786_v2 = vadd.f32 %v785_v1, %v3828_v39  ;;  %v829_v5 = vmax.f32 %v782_v62, 0.0  ;;  %v3375_v62 = vld [vmem:[%s4459_s4 + $0x44] ss:$8 sps:$4 sm:$0xff]   ;;  %v3373_v1 = vld [vmem:[%s4459_s4 + $0x40] ss:$8 sps:$4 sm:$0xff]  }
 0x20a   : > { %v830_v4 = vmax.f32 %v784_v0, 0.0 }
 0x20b   : > { %v831_v6 = vmax.f32 %v786_v2, 0.0 }
 0x20c   : > { %v850_v7 = vpack.c.bf16 %v830_v4, %v828_v3  ;;  %v3378_v3 = vld [vmem:[%s4459_s4 + $0x54] ss:$8 sps:$4 sm:$0xff]  }
 0x20d   : > { %v851_v8 = vpack.c.bf16 %v831_v6, %v829_v5  ;;  %v789_v9 = vpop.f32.mrb[24].mxu1 }
 0x20e   : > { %v790_v10 = vadd.f32 %v789_v9, %v3825_v38  ;;  %v791_v11 = vpop.f32.mrb[25].mxu1 }
 0x20f   : > { %v792_v12 = vadd.f32 %v791_v11, %v3828_v39  ;;  %v793_v13 = vpop.f32.mrb[26].mxu1  ;;  %1130 = vmatprep.mubr.bf16.mxu0 %v851_v8  ;;  %v3381_v8 = vld [vmem:[%s4459_s4 + $0x64] ss:$8 sps:$4 sm:$0xff]   ;;  %v3379_v11 = vld [vmem:[%s4459_s4 + $0x60] ss:$8 sps:$4 sm:$0xff]  }
 0x210   : > { %v794_v14 = vadd.f32 %v793_v13, %v3825_v38  ;;  %v795_v15 = vpop.f32.mrb[27].mxu1  ;;  %1131 = vmatmul.mubr.bf16.gmra.mrb[36].mxu0 %v850_v7  ;;  %v832_v17 = vmax.f32 %v790_v10, 0.0  ;;  %v3376_v7 = vld [vmem:[%s4459_s4 + $0x50] ss:$8 sps:$4 sm:$0xff]   ;;  %v3384_v13 = vld [vmem:[%s4459_s4 + $0x74] ss:$8 sps:$4 sm:$0xff]  }
 0x211   : > { %v796_v16 = vadd.f32 %v795_v15, %v3828_v39  ;;  %v833_v19 = vmax.f32 %v792_v12, 0.0 }
 0x212   : > { %v834_v18 = vmax.f32 %v794_v14, 0.0 }
 0x213   : > { %v835_v20 = vmax.f32 %v796_v16, 0.0 }
 0x214   : > { %v852_v21 = vpack.c.bf16 %v834_v18, %v832_v17  ;;  %v3382_v17 = vld [vmem:[%s4459_s4 + $0x70] ss:$8 sps:$4 sm:$0xff]   ;;  %v3387_v18 = vld [vmem:[%s4459_s4 + $0x84] ss:$8 sps:$4 sm:$0xff]  }
 0x215   : > { %v853_v22 = vpack.c.bf16 %v835_v20, %v833_v19  ;;  %v799_v30 = vpop.f32.mrb[28].mxu1 }
 0x216   : > { %v800_v31 = vadd.f32 %v799_v30, %v3825_v38  ;;  %v801_v34 = vpop.f32.mrb[29].mxu1  ;;  %v3390_v30 = vld [vmem:[%s4459_s4 + $0x94] ss:$8 sps:$4 sm:$0xff]  }
 0x217   : > { %v802_v36 = vadd.f32 %v801_v34, %v3828_v39  ;;  %v803_v40 = vpop.f32.mrb[30].mxu1  ;;  %1140 = vmatprep.mubr.bf16.mxu0 %v853_v22 }
 0x218   : > { %v804_v41 = vadd.f32 %v803_v40, %v3825_v38  ;;  %v805_v42 = vpop.f32.mrb[31].mxu1  ;;  %1141 = vmatmul.mubr.bf16.gmra.mrb[40].mxu0 %v852_v21  ;;  %v836_v44 = vmax.f32 %v800_v31, 0.0  ;;  %v3363_v38 = vld [vmem:[%s4459_s4 + $0x4] ss:$8 sps:$4 sm:$0xff]   ;;  %v3385_v21 = vld [vmem:[%s4459_s4 + $0x80] ss:$8 sps:$4 sm:$0xff]  }
 0x219   : > { %v806_v43 = vadd.f32 %v805_v42, %v3828_v39  ;;  %v837_v46 = vmax.f32 %v802_v36, 0.0  ;;  %v3366_v39 = vld [vmem:[%s4459_s4 + $0x14] ss:$8 sps:$4 sm:$0xff]   ;;  %1543 = vmatprep.subr.bf16.mxu0 %v3363_v38  ;;  %v3388_v40 = vld [vmem:[%s4459_s4 + $0x90] ss:$8 sps:$4 sm:$0xff]  }
 0x21a   : > { %v838_v45 = vmax.f32 %v804_v41, 0.0  ;;  %1544 = vmatpush1.bf16.msra.mxu0 %v3361_v50  ;;  %v3393_v41 = vld [vmem:[%s4459_s4 + $0xa4] ss:$8 sps:$4 sm:$0xff]   ;;  %v3394_v50 = vld [vmem:[%s4459_s4 + $0xb0] ss:$8 sps:$4 sm:$0xff]  }
 0x21b   : > { %v839_v47 = vmax.f32 %v806_v43, 0.0  ;;  %1545 = vmatprep.subr.bf16.mxu0 %v3366_v39  ;;  %v3399_v38 = vld [vmem:[%s4459_s4 + $0xc4] ss:$8 sps:$4 sm:$0xff]  }
 0x21c   : > { %v854_v48 = vpack.c.bf16 %v838_v45, %v836_v44  ;;  %v3391_v44 = vld [vmem:[%s4459_s4 + $0xa0] ss:$8 sps:$4 sm:$0xff]  }
 0x21d   : > { %v855_v49 = vpack.c.bf16 %v839_v47, %v837_v46  ;;  %v3396_v46 = vld [vmem:[%s4459_s4 + $0xb4] ss:$8 sps:$4 sm:$0xff]  }
 0x21e   : > { %1546 = vmatpush1.bf16.msra.mxu0 %v3364_v51 }
 0x21f   : > { %1150 = vmatprep.mubr.bf16.mxu0 %v855_v49  ;;  %1547 = vmatprep.subr.bf16.mxu0 %v3369_v52  ;;  %v3397_v52 = vld [vmem:[%s4459_s4 + $0xc0] ss:$8 sps:$4 sm:$0xff]  }
 0x220   : > { %1151 = vmatmul.mubr.bf16.gmra.mrb[44].mxu0 %v854_v48 }
 0x222   : > { %1548 = vmatpush1.bf16.msra.mxu0 %v3367_v55 }
 0x223   : > { %1549 = vmatprep.subr.bf16.mxu0 %v3372_v57 }
 0x226   : > { %1550 = vmatpush1.bf16.msra.mxu0 %v3370_v61 }
 0x227   : > { %1551 = vmatprep.subr.bf16.mxu0 %v3375_v62 }
 0x22a   : > { %1552 = vmatpush1.bf16.msra.mxu0 %v3373_v1 }
 0x22b   : > { %1553 = vmatprep.subr.bf16.mxu0 %v3378_v3 }
 0x22e   : > { %1554 = vmatpush1.bf16.msra.mxu0 %v3376_v7  ;;  %v3947_v7 = vld [vmem:[%s3648_s12] sm:$0xff]  }
 0x22f   : > { %1555 = vmatprep.subr.bf16.mxu0 %v3381_v8 }
 0x232   : > { %1556 = vmatpush1.bf16.msra.mxu0 %v3379_v11 }
 0x233   : > { %1557 = vmatprep.subr.bf16.mxu0 %v3384_v13 }
 0x236   : > { %1558 = vmatpush1.bf16.msra.mxu0 %v3382_v17 }
 0x237   : > { %1559 = vmatprep.subr.bf16.mxu0 %v3387_v18 }
 0x23a   : > { %1560 = vmatpush1.bf16.msra.mxu0 %v3385_v21 }
 0x23b   : > { %1561 = vmatprep.subr.bf16.mxu0 %v3390_v30 }
 0x23e   : > { %1562 = vmatpush1.bf16.msra.mxu0 %v3388_v40 }
 0x23f   : > { %1563 = vmatprep.subr.bf16.mxu0 %v3393_v41 }
 0x242   : > { %1564 = vmatpush1.bf16.msra.mxu0 %v3391_v44 }
 0x243   : > { %1565 = vmatprep.subr.bf16.mxu0 %v3396_v46 }
 0x246   : > { %1566 = vmatpush1.bf16.msra.mxu0 %v3394_v50 }
 0x247   : > { %1567 = vmatprep.subr.bf16.mxu0 %v3399_v38 }
 0x24a   : > { %1568 = vmatpush1.bf16.msra.mxu0 %v3397_v52 }
 0x2bb   : > { %v1082_v53 = vpop.f32.mrb[16].mxu0 }
 0x2bc   : > { %v1084_v54 = vpop.f32.mrb[17].mxu0 }
 0x2bd   : > { %v1086_v56 = vpop.f32.mrb[18].mxu0 }
 0x2be   : > { %v1161_v58 = vpack.c.bf16 %v1086_v56, %v1082_v53  ;;  %v1088_v59 = vpop.f32.mrb[19].mxu0 }
 0x2bf   : > { %v1162_v60 = vpack.c.bf16 %v1088_v59, %v1084_v54  ;;  %v3402_v54 = vld [vmem:[%s4459_s4 + $0xd4] ss:$8 sps:$4 sm:$0xff]  }
 0x2c0   : > { %1569 = vmatprep.subr.bf16.mxu0 %v3402_v54 }
 0x2c1   : > { %1190 = vmatprep.subr.bf16.mxu1 %v1162_v60 }
 0x2c2   : > { %1191 = vmatpush1.bf16.msra.mxu1 %v1161_v58  ;;  %v3400_v58 = vld [vmem:[%s4459_s4 + $0xd0] ss:$8 sps:$4 sm:$0xff]  }
 0x2c3   : > { %v1092_v63 = vpop.f32.mrb[20].mxu0  ;;  %1570 = vmatpush1.bf16.msra.mxu0 %v3400_v58 }
 0x2c4   : > { %v1094_v0 = vpop.f32.mrb[21].mxu0 }
 0x2c5   : > { %v1096_v2 = vpop.f32.mrb[22].mxu0 }
 0x2c6   : > { %v1163_v4 = vpack.c.bf16 %v1096_v2, %v1092_v63  ;;  %v1098_v5 = vpop.f32.mrb[23].mxu0 }
 0x2c7   : > { %v1164_v6 = vpack.c.bf16 %v1098_v5, %v1094_v0 }
 0x2c9   : > { %1192 = vmatprep.subr.bf16.mxu1 %v1164_v6 }
 0x2ca   : > { %1193 = vmatpush1.bf16.msra.mxu1 %v1163_v4 }
 0x2cb   : > { %v1102_v9 = vpop.f32.mrb[24].mxu0 }
 0x2cc   : > { %v1104_v10 = vpop.f32.mrb[25].mxu0 }
 0x2cd   : > { %v1106_v12 = vpop.f32.mrb[26].mxu0 }
 0x2ce   : > { %v1165_v14 = vpack.c.bf16 %v1106_v12, %v1102_v9  ;;  %v1108_v15 = vpop.f32.mrb[27].mxu0 }
 0x2cf   : > { %v1166_v16 = vpack.c.bf16 %v1108_v15, %v1104_v10 }
 0x2d1   : > { %1194 = vmatprep.subr.bf16.mxu1 %v1166_v16 }
 0x2d2   : > { %1195 = vmatpush1.bf16.msra.mxu1 %v1165_v14 }
 0x2d3   : > { %v1112_v19 = vpop.f32.mrb[28].mxu0 }
 0x2d4   : > { %v1114_v20 = vpop.f32.mrb[29].mxu0 }
 0x2d5   : > { %v1116_v22 = vpop.f32.mrb[30].mxu0 }
 0x2d6   : > { %v1167_v31 = vpack.c.bf16 %v1116_v22, %v1112_v19  ;;  %v1118_v34 = vpop.f32.mrb[31].mxu0 }
 0x2d7   : > { %v1168_v36 = vpack.c.bf16 %v1118_v34, %v1114_v20 }
 0x2d9   : > { %1196 = vmatprep.subr.bf16.mxu1 %v1168_v36 }
 0x2da   : > { %1197 = vmatpush1.bf16.msra.mxu1 %v1167_v31 }
 0x2db   : > { %v1122_v42 = vpop.f32.mrb[32].mxu0 }
 0x2dc   : > { %v1124_v43 = vpop.f32.mrb[33].mxu0 }
 0x2dd   : > { %v1126_v45 = vpop.f32.mrb[34].mxu0 }
 0x2de   : > { %v1169_v47 = vpack.c.bf16 %v1126_v45, %v1122_v42  ;;  %v1128_v48 = vpop.f32.mrb[35].mxu0 }
 0x2df   : > { %v1170_v49 = vpack.c.bf16 %v1128_v48, %v1124_v43 }
 0x2e1   : > { %1198 = vmatprep.subr.bf16.mxu1 %v1170_v49 }
 0x2e2   : > { %1199 = vmatpush1.bf16.msra.mxu1 %v1169_v47 }
 0x2e3   : > { %v1132_v39 = vpop.f32.mrb[36].mxu0 }
 0x2e4   : > { %v1134_v51 = vpop.f32.mrb[37].mxu0 }
 0x2e5   : > { %v1136_v53 = vpop.f32.mrb[38].mxu0 }
 0x2e6   : > { %v1171_v55 = vpack.c.bf16 %v1136_v53, %v1132_v39  ;;  %v1138_v56 = vpop.f32.mrb[39].mxu0 }
 0x2e7   : > { %v1172_v57 = vpack.c.bf16 %v1138_v56, %v1134_v51 }
 0x2e9   : > { %1200 = vmatprep.subr.bf16.mxu1 %v1172_v57 }
 0x2ea   : > { %1201 = vmatpush1.bf16.msra.mxu1 %v1171_v55 }
 0x2eb   : > { %v1142_v59 = vpop.f32.mrb[40].mxu0 }
 0x2ec   : > { %v1144_v60 = vpop.f32.mrb[41].mxu0 }
 0x2ed   : > { %v1146_v61 = vpop.f32.mrb[42].mxu0 }
 0x2ee   : > { %v1173_v62 = vpack.c.bf16 %v1146_v61, %v1142_v59  ;;  %v1148_v63 = vpop.f32.mrb[43].mxu0 }
 0x2ef   : > { %v1174_v0 = vpack.c.bf16 %v1148_v63, %v1144_v60 }
 0x2f1   : > { %1202 = vmatprep.subr.bf16.mxu1 %v1174_v0 }
 0x2f2   : > { %1203 = vmatpush1.bf16.msra.mxu1 %v1173_v62 }
 0x2f3   : > { %v1152_v1 = vpop.f32.mrb[44].mxu0 }
 0x2f4   : > { %v1154_v2 = vpop.f32.mrb[45].mxu0 }
 0x2f5   : > { %v1156_v3 = vpop.f32.mrb[46].mxu0 }
 0x2f6   : > { %v1175_v4 = vpack.c.bf16 %v1156_v3, %v1152_v1  ;;  %v1158_v5 = vpop.f32.mrb[47].mxu0 }
 0x2f7   : > { %v1176_v6 = vpack.c.bf16 %v1158_v5, %v1154_v2 }
 0x2f9   : > { %1204 = vmatprep.subr.bf16.mxu1 %v1176_v6 }
 0x2fa   : > { %1205 = vmatpush1.bf16.msra.mxu1 %v1175_v4 }
 0x2fd   : > { %1223 = vmatmul.mubr.bf16.vlgmr.msra.gmra.mrb[32].mxu1 %v3947_v7 }
 0x2fe   : > { %1232 = vmatprep.mubr.bf16.mxu1 %v3554_v32 }
 0x305   : > { %1233 = vmatmul.mubr.bf16.gmra.mrb[36].mxu1 %v3678_v23  ;;  %v3405_v23 = vld [vmem:[%s4459_s4 + $0xe4] ss:$8 sps:$4 sm:$0xff]  }
 0x306   : > { %1242 = vmatprep.mubr.bf16.mxu1 %v3554_v32  ;;  %1571 = vmatprep.subr.bf16.mxu0 %v3405_v23 }
 0x30d   : > { %1243 = vmatmul.mubr.bf16.gmra.mrb[40].mxu1 %v3681_v24  ;;  %v3403_v24 = vld [vmem:[%s4459_s4 + $0xe0] ss:$8 sps:$4 sm:$0xff]  }
 0x30e   : > { %1252 = vmatprep.mubr.bf16.mxu1 %v3554_v32  ;;  %1572 = vmatpush1.bf16.msra.mxu0 %v3403_v24 }
 0x315   : > { %1253 = vmatmul.mubr.bf16.gmra.mrb[44].mxu1 %v3686_v25  ;;  %v3408_v25 = vld [vmem:[%s4459_s4 + $0xf4] ss:$8 sps:$4 sm:$0xff]  }
 0x316   : > { %1262 = vmatprep.mubr.bf16.mxu1 %v3554_v32  ;;  %1573 = vmatprep.subr.bf16.mxu0 %v3408_v25 }
 0x31d   : > { %1263 = vmatmul.mubr.bf16.gmra.mrb[48].mxu1 %v3689_v26  ;;  %v3406_v26 = vld [vmem:[%s4459_s4 + $0xf0] ss:$8 sps:$4 sm:$0xff]  }
 0x31e   : > { %1272 = vmatprep.mubr.bf16.mxu1 %v3554_v32  ;;  %1574 = vmatpush1.bf16.msra.mxu0 %v3406_v26 }
 0x325   : > { %1273 = vmatmul.mubr.bf16.gmra.mrb[52].mxu1 %v3694_v27  ;;  %v3015_v27 = vld [vmem:[%s4462_s7 + $0x1] ss:$4 sm:$0x3] }
 0x326   : > { %1282 = vmatprep.mubr.bf16.mxu1 %v3554_v32 }
 0x32d   : > { %1283 = vmatmul.mubr.bf16.gmra.mrb[56].mxu1 %v3697_v28  ;;  %v3981_v28 = vrot.slane %v3015_v27, %v3817_v35 }
 0x32e   : > { %1292 = vmatprep.mubr.bf16.mxu1 %v3554_v32 }
 0x335   : > { %1293 = vmatmul.mubr.bf16.gmra.mrb[60].mxu1 %v3702_v29  ;;  %v3984_v29 = vrot.slane %v3015_v27, %v3822_v37 }
 0x336   : > { %1717 = vmatprep.mubr.bf16.mxu1 %v3554_v32 }
 0x3d0   : > { %v1224_v8 = vpop.f32.mrb[32].mxu1 }
 0x3d1   : > { %v1225_v9 = vadd.f32 %v1224_v8, %v3981_v28  ;;  %v1226_v10 = vpop.f32.mrb[33].mxu1 }
 0x3d2   : > { %v1227_v11 = vadd.f32 %v1226_v10, %v3984_v29  ;;  %v1228_v12 = vpop.f32.mrb[34].mxu1 }
 0x3d3   : > { %v1229_v13 = vadd.f32 %v1228_v12, %v3981_v28  ;;  %v1230_v14 = vpop.f32.mrb[35].mxu1  ;;  %v1303_v16 = vmax.f32 %v1225_v9, 0.0 }
 0x3d4   : > { %v1231_v15 = vadd.f32 %v1230_v14, %v3984_v29  ;;  %v1304_v18 = vmax.f32 %v1227_v11, 0.0 }
 0x3d5   : > { %v1305_v17 = vmax.f32 %v1229_v13, 0.0 }
 0x3d6   : > { %v1306_v19 = vmax.f32 %v1231_v15, 0.0 }
 0x3d7   : > { %v1335_v20 = vpack.c.bf16 %v1305_v17, %v1303_v16 }
 0x3d8   : > { %v1336_v21 = vpack.c.bf16 %v1306_v19, %v1304_v18  ;;  %v1234_v22 = vpop.f32.mrb[36].mxu1 }
 0x3d9   : > { %v1235_v30 = vadd.f32 %v1234_v22, %v3981_v28  ;;  %v1236_v31 = vpop.f32.mrb[37].mxu1 }
 0x3da   : > { %v1237_v34 = vadd.f32 %v1236_v31, %v3984_v29  ;;  %v1238_v36 = vpop.f32.mrb[38].mxu1  ;;  %1575 = vmatprep.mubr.bf16.mxu0 %v1336_v21 }
 0x3db   : > { %v1239_v40 = vadd.f32 %v1238_v36, %v3981_v28  ;;  %v1240_v41 = vpop.f32.mrb[39].mxu1  ;;  %1576 = vmatmul.mubr.bf16.vlgmr.msra.gmra.mrb[48].mxu0 %v1335_v20  ;;  %v1307_v43 = vmax.f32 %v1235_v30, 0.0 }
 0x3dc   : > { %v1241_v42 = vadd.f32 %v1240_v41, %v3984_v29  ;;  %v1308_v45 = vmax.f32 %v1237_v34, 0.0 }
 0x3dd   : > { %v1309_v44 = vmax.f32 %v1239_v40, 0.0 }
 0x3de   : > { %v1310_v46 = vmax.f32 %v1241_v42, 0.0 }
 0x3df   : > { %v1337_v47 = vpack.c.bf16 %v1309_v44, %v1307_v43 }
 0x3e0   : > { %v1338_v48 = vpack.c.bf16 %v1310_v46, %v1308_v45  ;;  %v1244_v49 = vpop.f32.mrb[40].mxu1 }
 0x3e1   : > { %v1245_v50 = vadd.f32 %v1244_v49, %v3981_v28  ;;  %v1246_v38 = vpop.f32.mrb[41].mxu1 }
 0x3e2   : > { %v1247_v39 = vadd.f32 %v1246_v38, %v3984_v29  ;;  %v1248_v51 = vpop.f32.mrb[42].mxu1  ;;  %1585 = vmatprep.mubr.bf16.mxu0 %v1338_v48 }
 0x3e3   : > { %v1249_v52 = vadd.f32 %v1248_v51, %v3981_v28  ;;  %v1250_v53 = vpop.f32.mrb[43].mxu1  ;;  %1586 = vmatmul.mubr.bf16.gmra.mrb[52].mxu0 %v1337_v47  ;;  %v1311_v55 = vmax.f32 %v1245_v50, 0.0 }
 0x3e4   : > { %v1251_v54 = vadd.f32 %v1250_v53, %v3984_v29  ;;  %v1312_v57 = vmax.f32 %v1247_v39, 0.0 }
 0x3e5   : > { %v1313_v56 = vmax.f32 %v1249_v52, 0.0 }
 0x3e6   : > { %v1314_v58 = vmax.f32 %v1251_v54, 0.0 }
 0x3e7   : > { %v1339_v59 = vpack.c.bf16 %v1313_v56, %v1311_v55 }
 0x3e8   : > { %v1340_v60 = vpack.c.bf16 %v1314_v58, %v1312_v57  ;;  %v1254_v61 = vpop.f32.mrb[44].mxu1 }
 0x3e9   : > { %v1255_v62 = vadd.f32 %v1254_v61, %v3981_v28  ;;  %v1256_v63 = vpop.f32.mrb[45].mxu1 }
 0x3ea   : > { %v1257_v0 = vadd.f32 %v1256_v63, %v3984_v29  ;;  %v1258_v1 = vpop.f32.mrb[46].mxu1  ;;  %1595 = vmatprep.mubr.bf16.mxu0 %v1340_v60 }
 0x3eb   : > { %v1259_v2 = vadd.f32 %v1258_v1, %v3981_v28  ;;  %v1260_v3 = vpop.f32.mrb[47].mxu1  ;;  %1596 = vmatmul.mubr.bf16.gmra.mrb[56].mxu0 %v1339_v59  ;;  %v1315_v5 = vmax.f32 %v1255_v62, 0.0 }
 0x3ec   : > { %v1261_v4 = vadd.f32 %v1260_v3, %v3984_v29  ;;  %v1316_v23 = vmax.f32 %v1257_v0, 0.0 }
 0x3ed   : > { %v1317_v6 = vmax.f32 %v1259_v2, 0.0 }
 0x3ee   : > { %v1318_v24 = vmax.f32 %v1261_v4, 0.0 }
 0x3ef   : > { %v1341_v25 = vpack.c.bf16 %v1317_v6, %v1315_v5 }
 0x3f0   : > { %v1342_v26 = vpack.c.bf16 %v1318_v24, %v1316_v23  ;;  %v1264_v27 = vpop.f32.mrb[48].mxu1 }
 0x3f1   : > { %v1265_v8 = vadd.f32 %v1264_v27, %v3981_v28  ;;  %v1266_v9 = vpop.f32.mrb[49].mxu1  ;;  %v3412_v27 = vld [vmem:[%s4460_s5 + $0x10] ss:$8 sps:$4 sm:$0xff]  }
 0x3f2   : > { %v1267_v10 = vadd.f32 %v1266_v9, %v3984_v29  ;;  %v1268_v11 = vpop.f32.mrb[50].mxu1  ;;  %1605 = vmatprep.mubr.bf16.mxu0 %v1342_v26  ;;  %v3409_v26 = vld [vmem:[%s4460_s5] ss:$8 sps:$4 sm:$0xff]  }
 0x3f3   : > { %v1269_v12 = vadd.f32 %v1268_v11, %v3981_v28  ;;  %v1270_v13 = vpop.f32.mrb[51].mxu1  ;;  %1606 = vmatmul.mubr.bf16.gmra.mrb[60].mxu0 %v1341_v25  ;;  %v1319_v15 = vmax.f32 %v1265_v8, 0.0  ;;  %v3417_v8 = vld [vmem:[%s4460_s5 + $0x24] ss:$8 sps:$4 sm:$0xff]   ;;  %v3415_v11 = vld [vmem:[%s4460_s5 + $0x20] ss:$8 sps:$4 sm:$0xff]  }
 0x3f4   : > { %v1271_v14 = vadd.f32 %v1270_v13, %v3984_v29  ;;  %v1320_v17 = vmax.f32 %v1267_v10, 0.0  ;;  %v3420_v13 = vld [vmem:[%s4460_s5 + $0x34] ss:$8 sps:$4 sm:$0xff]  }
 0x3f5   : > { %v1321_v16 = vmax.f32 %v1269_v12, 0.0 }
 0x3f6   : > { %v1322_v18 = vmax.f32 %v1271_v14, 0.0 }
 0x3f7   : > { %v1343_v19 = vpack.c.bf16 %v1321_v16, %v1319_v15 }
 0x3f8   : > { %v1344_v20 = vpack.c.bf16 %v1322_v18, %v1320_v17  ;;  %v1274_v21 = vpop.f32.mrb[52].mxu1  ;;  %v3418_v17 = vld [vmem:[%s4460_s5 + $0x30] ss:$8 sps:$4 sm:$0xff]   ;;  %v3423_v18 = vld [vmem:[%s4460_s5 + $0x44] ss:$8 sps:$4 sm:$0xff]  }
 0x3f9   : > { %v1275_v22 = vadd.f32 %v1274_v21, %v3981_v28  ;;  %v1276_v30 = vpop.f32.mrb[53].mxu1  ;;  %v3421_v21 = vld [vmem:[%s4460_s5 + $0x40] ss:$8 sps:$4 sm:$0xff]  }
 0x3fa   : > { %v1277_v31 = vadd.f32 %v1276_v30, %v3984_v29  ;;  %v1278_v34 = vpop.f32.mrb[54].mxu1  ;;  %1615 = vmatprep.mubr.bf16.mxu0 %v1344_v20  ;;  %v3426_v30 = vld [vmem:[%s4460_s5 + $0x54] ss:$8 sps:$4 sm:$0xff]  }
 0x3fb   : > { %v1279_v36 = vadd.f32 %v1278_v34, %v3981_v28  ;;  %v1280_v40 = vpop.f32.mrb[55].mxu1  ;;  %1616 = vmatmul.mubr.bf16.gmra.mrb[64].mxu0 %v1343_v19  ;;  %v1323_v42 = vmax.f32 %v1275_v22, 0.0 }
 0x3fc   : > { %v1281_v41 = vadd.f32 %v1280_v40, %v3984_v29  ;;  %v1324_v44 = vmax.f32 %v1277_v31, 0.0  ;;  %v3424_v40 = vld [vmem:[%s4460_s5 + $0x50] ss:$8 sps:$4 sm:$0xff]  }
 0x3fd   : > { %v1325_v43 = vmax.f32 %v1279_v36, 0.0 }
 0x3fe   : > { %v1326_v45 = vmax.f32 %v1281_v41, 0.0  ;;  %v3429_v41 = vld [vmem:[%s4460_s5 + $0x64] ss:$8 sps:$4 sm:$0xff]  }
 0x3ff   : > { %v1345_v46 = vpack.c.bf16 %v1325_v43, %v1323_v42 }
 0x400   : > { %v1346_v47 = vpack.c.bf16 %v1326_v45, %v1324_v44  ;;  %v1284_v48 = vpop.f32.mrb[56].mxu1  ;;  %v3427_v44 = vld [vmem:[%s4460_s5 + $0x60] ss:$8 sps:$4 sm:$0xff]  }
 0x401   : > { %v1285_v49 = vadd.f32 %v1284_v48, %v3981_v28  ;;  %v1286_v50 = vpop.f32.mrb[57].mxu1 }
 0x402   : > { %v1287_v38 = vadd.f32 %v1286_v50, %v3984_v29  ;;  %v1288_v39 = vpop.f32.mrb[58].mxu1  ;;  %1625 = vmatprep.mubr.bf16.mxu0 %v1346_v47  ;;  %v3430_v50 = vld [vmem:[%s4460_s5 + $0x70] ss:$8 sps:$4 sm:$0xff]  }
 0x403   : > { %v1289_v51 = vadd.f32 %v1288_v39, %v3981_v28  ;;  %v1290_v52 = vpop.f32.mrb[59].mxu1  ;;  %1626 = vmatmul.mubr.bf16.gmra.mrb[68].mxu0 %v1345_v46  ;;  %v1327_v54 = vmax.f32 %v1285_v49, 0.0  ;;  %v3432_v46 = vld [vmem:[%s4460_s5 + $0x74] ss:$8 sps:$4 sm:$0xff]  }
 0x404   : > { %v1291_v53 = vadd.f32 %v1290_v52, %v3984_v29  ;;  %v1328_v56 = vmax.f32 %v1287_v38, 0.0  ;;  %v3435_v38 = vld [vmem:[%s4460_s5 + $0x84] ss:$8 sps:$4 sm:$0xff]   ;;  %v3433_v52 = vld [vmem:[%s4460_s5 + $0x80] ss:$8 sps:$4 sm:$0xff]  }
 0x405   : > { %v1329_v55 = vmax.f32 %v1289_v51, 0.0 }
 0x406   : > { %v1330_v57 = vmax.f32 %v1291_v53, 0.0 }
 0x407   : > { %v1347_v58 = vpack.c.bf16 %v1329_v55, %v1327_v54  ;;  %v3438_v54 = vld [vmem:[%s4460_s5 + $0x94] ss:$8 sps:$4 sm:$0xff]  }
 0x408   : > { %v1348_v59 = vpack.c.bf16 %v1330_v57, %v1328_v56  ;;  %v1294_v60 = vpop.f32.mrb[60].mxu1 }
 0x409   : > { %v1295_v61 = vadd.f32 %v1294_v60, %v3981_v28  ;;  %v1296_v62 = vpop.f32.mrb[61].mxu1 }
 0x40a   : > { %v1297_v63 = vadd.f32 %v1296_v62, %v3984_v29  ;;  %v1298_v0 = vpop.f32.mrb[62].mxu1  ;;  %1635 = vmatprep.mubr.bf16.mxu0 %v1348_v59  ;;  %v3441_v59 = vld [vmem:[%s4460_s5 + $0xa4] ss:$8 sps:$4 sm:$0xff]   ;;  %v3439_v62 = vld [vmem:[%s4460_s5 + $0xa0] ss:$8 sps:$4 sm:$0xff]  }
 0x40b   : > { %v1299_v1 = vadd.f32 %v1298_v0, %v3981_v28  ;;  %v1300_v2 = vpop.f32.mrb[63].mxu1  ;;  %1636 = vmatmul.mubr.bf16.gmra.mrb[72].mxu0 %v1347_v58  ;;  %v1331_v4 = vmax.f32 %v1295_v61, 0.0  ;;  %v3411_v28 = vld [vmem:[%s4460_s5 + $0x4] ss:$8 sps:$4 sm:$0xff]   ;;  %v3436_v58 = vld [vmem:[%s4460_s5 + $0x90] ss:$8 sps:$4 sm:$0xff]  }
 0x40c   : > { %v1301_v3 = vadd.f32 %v1300_v2, %v3984_v29  ;;  %v1332_v6 = vmax.f32 %v1297_v63, 0.0  ;;  %v3414_v29 = vld [vmem:[%s4460_s5 + $0x14] ss:$8 sps:$4 sm:$0xff]   ;;  %2038 = vmatprep.subr.bf16.mxu0 %v3411_v28 }
 0x40d   : > { %v1333_v5 = vmax.f32 %v1299_v1, 0.0  ;;  %2039 = vmatpush1.bf16.msra.mxu0 %v3409_v26  ;;  %v3444_v0 = vld [vmem:[%s4460_s5 + $0xb4] ss:$8 sps:$4 sm:$0xff]  }
 0x40e   : > { %v1334_v23 = vmax.f32 %v1301_v3, 0.0  ;;  %2040 = vmatprep.subr.bf16.mxu0 %v3414_v29  ;;  %v3450_v26 = vld [vmem:[%s4460_s5 + $0xd4] ss:$8 sps:$4 sm:$0xff]  }
 0x40f   : > { %v1349_v24 = vpack.c.bf16 %v1333_v5, %v1331_v4  ;;  %v3442_v4 = vld [vmem:[%s4460_s5 + $0xb0] ss:$8 sps:$4 sm:$0xff]   ;;  %v3447_v5 = vld [vmem:[%s4460_s5 + $0xc4] ss:$8 sps:$4 sm:$0xff]  }
 0x410   : > { %v1350_v25 = vpack.c.bf16 %v1334_v23, %v1332_v6 }
 0x411   : > { %2041 = vmatpush1.bf16.msra.mxu0 %v3412_v27 }
 0x412   : > { %1645 = vmatprep.mubr.bf16.mxu0 %v1350_v25  ;;  %2042 = vmatprep.subr.bf16.mxu0 %v3417_v8  ;;  %v3448_v8 = vld [vmem:[%s4460_s5 + $0xd0] ss:$8 sps:$4 sm:$0xff]  }
 0x413   : > { %1646 = vmatmul.mubr.bf16.gmra.mrb[76].mxu0 %v1349_v24  ;;  %v3445_v24 = vld [vmem:[%s4460_s5 + $0xc0] ss:$8 sps:$4 sm:$0xff]  }
 0x415   : > { %2043 = vmatpush1.bf16.msra.mxu0 %v3415_v11 }
 0x416   : > { %2044 = vmatprep.subr.bf16.mxu0 %v3420_v13 }
 0x419   : > { %2045 = vmatpush1.bf16.msra.mxu0 %v3418_v17 }
 0x41a   : > { %2046 = vmatprep.subr.bf16.mxu0 %v3423_v18 }
 0x41d   : > { %2047 = vmatpush1.bf16.msra.mxu0 %v3421_v21  ;;  %v4105_v21 = vld [vmem:[%s3648_s12 + $0x8] sm:$0xff]  }
 0x41e   : > { %2048 = vmatprep.subr.bf16.mxu0 %v3426_v30  ;;  %v4115_v30 = vld [vmem:[%s3648_s12 + $0x18] sm:$0xff]  }
 0x421   : > { %2049 = vmatpush1.bf16.msra.mxu0 %v3424_v40  ;;  %v3453_v40 = vld [vmem:[%s4460_s5 + $0xe4] ss:$8 sps:$4 sm:$0xff]  }
 0x422   : > { %2050 = vmatprep.subr.bf16.mxu0 %v3429_v41  ;;  %v3451_v41 = vld [vmem:[%s4460_s5 + $0xe0] ss:$8 sps:$4 sm:$0xff]  }
 0x425   : > { %2051 = vmatpush1.bf16.msra.mxu0 %v3427_v44  ;;  %v3048_v44 = vld [vmem:[%s4462_s7 + $0x2] ss:$4 sm:$0x3] }
 0x426   : > { %2052 = vmatprep.subr.bf16.mxu0 %v3432_v46  ;;  %v4158_v46 = vrot.slane %v3048_v44, %v3822_v37 }
 0x429   : > { %2053 = vmatpush1.bf16.msra.mxu0 %v3430_v50 }
 0x42a   : > { %2054 = vmatprep.subr.bf16.mxu0 %v3435_v38 }
 0x42d   : > { %2055 = vmatpush1.bf16.msra.mxu0 %v3433_v52 }
 0x42e   : > { %2056 = vmatprep.subr.bf16.mxu0 %v3438_v54 }
 0x431   : > { %2057 = vmatpush1.bf16.msra.mxu0 %v3436_v58 }
 0x432   : > { %2058 = vmatprep.subr.bf16.mxu0 %v3441_v59 }
 0x435   : > { %2059 = vmatpush1.bf16.msra.mxu0 %v3439_v62 }
 0x436   : > { %2060 = vmatprep.subr.bf16.mxu0 %v3444_v0 }
 0x439   : > { %2061 = vmatpush1.bf16.msra.mxu0 %v3442_v4 }
 0x43a   : > { %2062 = vmatprep.subr.bf16.mxu0 %v3447_v5 }
 0x43d   : > { %2063 = vmatpush1.bf16.msra.mxu0 %v3445_v24 }
 0x43e   : > { %2064 = vmatprep.subr.bf16.mxu0 %v3450_v26 }
 0x441   : > { %2065 = vmatpush1.bf16.msra.mxu0 %v3448_v8 }
 0x442   : > { %2066 = vmatprep.subr.bf16.mxu0 %v3453_v40 }
 0x445   : > { %2067 = vmatpush1.bf16.msra.mxu0 %v3451_v41 }
 0x4ae   : > { %v1577_v9 = vpop.f32.mrb[48].mxu0 }
 0x4af   : > { %v1579_v10 = vpop.f32.mrb[49].mxu0 }
 0x4b0   : > { %v1581_v12 = vpop.f32.mrb[50].mxu0 }
 0x4b1   : > { %v1656_v14 = vpack.c.bf16 %v1581_v12, %v1577_v9  ;;  %v1583_v15 = vpop.f32.mrb[51].mxu0 }
 0x4b2   : > { %v1657_v16 = vpack.c.bf16 %v1583_v15, %v1579_v10 }
 0x4b4   : > { %1685 = vmatprep.subr.bf16.mxu1 %v1657_v16 }
 0x4b5   : > { %1686 = vmatpush1.bf16.msra.mxu1 %v1656_v14 }
 0x4b6   : > { %v1587_v19 = vpop.f32.mrb[52].mxu0 }
 0x4b7   : > { %v1589_v20 = vpop.f32.mrb[53].mxu0 }
 0x4b8   : > { %v1591_v22 = vpop.f32.mrb[54].mxu0 }
 0x4b9   : > { %v1658_v31 = vpack.c.bf16 %v1591_v22, %v1587_v19  ;;  %v1593_v34 = vpop.f32.mrb[55].mxu0  ;;  %v4110_v22 = vld [vmem:[%s3648_s12 + $0x10] sm:$0xff]  }
 0x4ba   : > { %v1659_v36 = vpack.c.bf16 %v1593_v34, %v1589_v20  ;;  %v4130_v34 = vld [vmem:[%s3648_s12 + $0x30] sm:$0xff]  }
 0x4bc   : > { %1687 = vmatprep.subr.bf16.mxu1 %v1659_v36  ;;  %v4135_v36 = vld [vmem:[%s3648_s12 + $0x38] sm:$0xff]  }
 0x4bd   : > { %1688 = vmatpush1.bf16.msra.mxu1 %v1658_v31  ;;  %v4125_v31 = vld [vmem:[%s3648_s12 + $0x28] sm:$0xff]  }
 0x4be   : > { %v1597_v42 = vpop.f32.mrb[56].mxu0 }
 0x4bf   : > { %v1599_v43 = vpop.f32.mrb[57].mxu0 }
 0x4c0   : > { %v1601_v45 = vpop.f32.mrb[58].mxu0 }
 0x4c1   : > { %v1660_v47 = vpack.c.bf16 %v1601_v45, %v1597_v42  ;;  %v1603_v48 = vpop.f32.mrb[59].mxu0  ;;  %v3456_v42 = vld [vmem:[%s4460_s5 + $0xf4] ss:$8 sps:$4 sm:$0xff]   ;;  %v4155_v45 = vrot.slane %v3048_v44, %v3817_v35 }
 0x4c2   : > { %v1661_v49 = vpack.c.bf16 %v1603_v48, %v1599_v43  ;;  %v3454_v43 = vld [vmem:[%s4460_s5 + $0xf0] ss:$8 sps:$4 sm:$0xff]   ;;  %2068 = vmatprep.subr.bf16.mxu0 %v3456_v42 }
 0x4c3   : > { %2069 = vmatpush1.bf16.msra.mxu0 %v3454_v43 }
 0x4c4   : > { %1689 = vmatprep.subr.bf16.mxu1 %v1661_v49 }
 0x4c5   : > { %1690 = vmatpush1.bf16.msra.mxu1 %v1660_v47 }
 0x4c6   : > { %v1607_v39 = vpop.f32.mrb[60].mxu0 }
 0x4c7   : > { %v1609_v51 = vpop.f32.mrb[61].mxu0 }
 0x4c8   : > { %v1611_v53 = vpop.f32.mrb[62].mxu0 }
 0x4c9   : > { %v1662_v55 = vpack.c.bf16 %v1611_v53, %v1607_v39  ;;  %v1613_v56 = vpop.f32.mrb[63].mxu0 }
 0x4ca   : > { %v1663_v57 = vpack.c.bf16 %v1613_v56, %v1609_v51 }
 0x4cc   : > { %1691 = vmatprep.subr.bf16.mxu1 %v1663_v57 }
 0x4cd   : > { %1692 = vmatpush1.bf16.msra.mxu1 %v1662_v55 }
 0x4ce   : > { %v1617_v60 = vpop.f32.mrb[64].mxu0 }
 0x4cf   : > { %v1619_v61 = vpop.f32.mrb[65].mxu0 }
 0x4d0   : > { %v1621_v63 = vpop.f32.mrb[66].mxu0 }
 0x4d1   : > { %v1664_v1 = vpack.c.bf16 %v1621_v63, %v1617_v60  ;;  %v1623_v2 = vpop.f32.mrb[67].mxu0 }
 0x4d2   : > { %v1665_v3 = vpack.c.bf16 %v1623_v2, %v1619_v61 }
 0x4d4   : > { %1693 = vmatprep.subr.bf16.mxu1 %v1665_v3 }
 0x4d5   : > { %1694 = vmatpush1.bf16.msra.mxu1 %v1664_v1 }
 0x4d6   : > { %v1627_v6 = vpop.f32.mrb[68].mxu0 }
 0x4d7   : > { %v1629_v23 = vpop.f32.mrb[69].mxu0 }
 0x4d8   : > { %v1631_v25 = vpop.f32.mrb[70].mxu0 }
 0x4d9   : > { %v1666_v28 = vpack.c.bf16 %v1631_v25, %v1627_v6  ;;  %v1633_v29 = vpop.f32.mrb[71].mxu0 }
 0x4da   : > { %v1667_v27 = vpack.c.bf16 %v1633_v29, %v1629_v23 }
 0x4dc   : > { %1695 = vmatprep.subr.bf16.mxu1 %v1667_v27 }
 0x4dd   : > { %1696 = vmatpush1.bf16.msra.mxu1 %v1666_v28 }
 0x4de   : > { %v1637_v9 = vpop.f32.mrb[72].mxu0 }
 0x4df   : > { %v1639_v10 = vpop.f32.mrb[73].mxu0 }
 0x4e0   : > { %v1641_v11 = vpop.f32.mrb[74].mxu0 }
 0x4e1   : > { %v1668_v12 = vpack.c.bf16 %v1641_v11, %v1637_v9  ;;  %v1643_v13 = vpop.f32.mrb[75].mxu0 }
 0x4e2   : > { %v1669_v14 = vpack.c.bf16 %v1643_v13, %v1639_v10 }
 0x4e4   : > { %1697 = vmatprep.subr.bf16.mxu1 %v1669_v14 }
 0x4e5   : > { %1698 = vmatpush1.bf16.msra.mxu1 %v1668_v12 }
 0x4e6   : > { %v1647_v15 = vpop.f32.mrb[76].mxu0 }
 0x4e7   : > { %v1649_v16 = vpop.f32.mrb[77].mxu0 }
 0x4e8   : > { %v1651_v17 = vpop.f32.mrb[78].mxu0 }
 0x4e9   : > { %v1670_v18 = vpack.c.bf16 %v1651_v17, %v1647_v15  ;;  %v1653_v19 = vpop.f32.mrb[79].mxu0 }
 0x4ea   : > { %v1671_v20 = vpack.c.bf16 %v1653_v19, %v1649_v16 }
 0x4ec   : > { %1699 = vmatprep.subr.bf16.mxu1 %v1671_v20 }
 0x4ed   : > { %1700 = vmatpush1.bf16.msra.mxu1 %v1670_v18 }
 0x4f0   : > { %1718 = vmatmul.mubr.bf16.vlgmr.msra.gmra.mrb[64].mxu1 %v3947_v7  ;;  %v4120_v7 = vld [vmem:[%s3648_s12 + $0x20] sm:$0xff]  }
 0x4f1   : > { %1727 = vmatprep.mubr.bf16.mxu1 %v3554_v32 }
 0x4f8   : > { %1728 = vmatmul.mubr.bf16.gmra.mrb[68].mxu1 %v4105_v21 }
 0x4f9   : > { %1737 = vmatprep.mubr.bf16.mxu1 %v3554_v32 }
 0x500   : > { %1738 = vmatmul.mubr.bf16.gmra.mrb[72].mxu1 %v4110_v22 }
 0x501   : > { %1747 = vmatprep.mubr.bf16.mxu1 %v3554_v32 }
 0x508   : > { %1748 = vmatmul.mubr.bf16.gmra.mrb[76].mxu1 %v4115_v30 }
 0x509   : > { %1757 = vmatprep.mubr.bf16.mxu1 %v3554_v32 }
 0x510   : > { %1758 = vmatmul.mubr.bf16.gmra.mrb[80].mxu1 %v4120_v7 }
 0x511   : > { %1767 = vmatprep.mubr.bf16.mxu1 %v3554_v32 }
 0x518   : > { %1768 = vmatmul.mubr.bf16.gmra.mrb[84].mxu1 %v4125_v31 }
 0x519   : > { %1777 = vmatprep.mubr.bf16.mxu1 %v3554_v32 }
 0x520   : > { %1778 = vmatmul.mubr.bf16.gmra.mrb[88].mxu1 %v4130_v34 }
 0x521   : > { %1787 = vmatprep.mubr.bf16.mxu1 %v3554_v32 }
 0x528   : > { %1788 = vmatmul.mubr.bf16.gmra.mrb[92].mxu1 %v4135_v36 }
 0x529   : > { %2212 = vmatprep.mubr.bf16.mxu1 %v3554_v32 }
 0x5c3   : > { %v1719_v47 = vpop.f32.mrb[64].mxu1 }
 0x5c4   : > { %v1720_v48 = vadd.f32 %v1719_v47, %v4155_v45  ;;  %v1721_v49 = vpop.f32.mrb[65].mxu1 }
 0x5c5   : > { %v1722_v50 = vadd.f32 %v1721_v49, %v4158_v46  ;;  %v1723_v38 = vpop.f32.mrb[66].mxu1 }
 0x5c6   : > { %v1724_v39 = vadd.f32 %v1723_v38, %v4155_v45  ;;  %v1725_v51 = vpop.f32.mrb[67].mxu1  ;;  %v1798_v53 = vmax.f32 %v1720_v48, 0.0 }
 0x5c7   : > { %v1726_v52 = vadd.f32 %v1725_v51, %v4158_v46  ;;  %v1799_v55 = vmax.f32 %v1722_v50, 0.0 }
 0x5c8   : > { %v1800_v54 = vmax.f32 %v1724_v39, 0.0 }
 0x5c9   : > { %v1801_v56 = vmax.f32 %v1726_v52, 0.0 }
 0x5ca   : > { %v1830_v57 = vpack.c.bf16 %v1800_v54, %v1798_v53 }
 0x5cb   : > { %v1831_v58 = vpack.c.bf16 %v1801_v56, %v1799_v55  ;;  %v1729_v59 = vpop.f32.mrb[68].mxu1 }
 0x5cc   : > { %v1730_v60 = vadd.f32 %v1729_v59, %v4155_v45  ;;  %v1731_v61 = vpop.f32.mrb[69].mxu1 }
 0x5cd   : > { %v1732_v62 = vadd.f32 %v1731_v61, %v4158_v46  ;;  %v1733_v63 = vpop.f32.mrb[70].mxu1  ;;  %2070 = vmatprep.mubr.bf16.mxu0 %v1831_v58 }
 0x5ce   : > { %v1734_v0 = vadd.f32 %v1733_v63, %v4155_v45  ;;  %v1735_v1 = vpop.f32.mrb[71].mxu1  ;;  %2071 = vmatmul.mubr.bf16.vlgmr.msra.gmra.mrb[80].mxu0 %v1830_v57  ;;  %v1802_v3 = vmax.f32 %v1730_v60, 0.0 }
 0x5cf   : > { %v1736_v2 = vadd.f32 %v1735_v1, %v4158_v46  ;;  %v1803_v5 = vmax.f32 %v1732_v62, 0.0 }
 0x5d0   : > { %v1804_v4 = vmax.f32 %v1734_v0, 0.0 }
 0x5d1   : > { %v1805_v6 = vmax.f32 %v1736_v2, 0.0 }
 0x5d2   : > { %v1832_v23 = vpack.c.bf16 %v1804_v4, %v1802_v3 }
 0x5d3   : > { %v1833_v24 = vpack.c.bf16 %v1805_v6, %v1803_v5  ;;  %v1739_v25 = vpop.f32.mrb[72].mxu1 }
 0x5d4   : > { %v1740_v26 = vadd.f32 %v1739_v25, %v4155_v45  ;;  %v1741_v28 = vpop.f32.mrb[73].mxu1 }
 0x5d5   : > { %v1742_v29 = vadd.f32 %v1741_v28, %v4158_v46  ;;  %v1743_v27 = vpop.f32.mrb[74].mxu1  ;;  %2080 = vmatprep.mubr.bf16.mxu0 %v1833_v24 }
 0x5d6   : > { %v1744_v8 = vadd.f32 %v1743_v27, %v4155_v45  ;;  %v1745_v9 = vpop.f32.mrb[75].mxu1  ;;  %2081 = vmatmul.mubr.bf16.gmra.mrb[84].mxu0 %v1832_v23  ;;  %v1806_v11 = vmax.f32 %v1740_v26, 0.0 }
 0x5d7   : > { %v1746_v10 = vadd.f32 %v1745_v9, %v4158_v46  ;;  %v1807_v13 = vmax.f32 %v1742_v29, 0.0 }
 0x5d8   : > { %v1808_v12 = vmax.f32 %v1744_v8, 0.0 }
 0x5d9   : > { %v1809_v14 = vmax.f32 %v1746_v10, 0.0 }
 0x5da   : > { %v1834_v15 = vpack.c.bf16 %v1808_v12, %v1806_v11 }
 0x5db   : > { %v1835_v16 = vpack.c.bf16 %v1809_v14, %v1807_v13  ;;  %v1749_v17 = vpop.f32.mrb[76].mxu1 }
 0x5dc   : > { %v1750_v18 = vadd.f32 %v1749_v17, %v4155_v45  ;;  %v1751_v19 = vpop.f32.mrb[77].mxu1 }
 0x5dd   : > { %v1752_v20 = vadd.f32 %v1751_v19, %v4158_v46  ;;  %v1753_v40 = vpop.f32.mrb[78].mxu1  ;;  %2090 = vmatprep.mubr.bf16.mxu0 %v1835_v16 }
 0x5de   : > { %v1754_v41 = vadd.f32 %v1753_v40, %v4155_v45  ;;  %v1755_v42 = vpop.f32.mrb[79].mxu1  ;;  %2091 = vmatmul.mubr.bf16.gmra.mrb[88].mxu0 %v1834_v15  ;;  %v1810_v44 = vmax.f32 %v1750_v18, 0.0 }
 0x5df   : > { %v1756_v43 = vadd.f32 %v1755_v42, %v4158_v46  ;;  %v1811_v48 = vmax.f32 %v1752_v20, 0.0 }
 0x5e0   : > { %v1812_v47 = vmax.f32 %v1754_v41, 0.0 }
 0x5e1   : > { %v1813_v49 = vmax.f32 %v1756_v43, 0.0 }
 0x5e2   : > { %v1836_v50 = vpack.c.bf16 %v1812_v47, %v1810_v44 }
 0x5e3   : > { %v1837_v38 = vpack.c.bf16 %v1813_v49, %v1811_v48  ;;  %v1759_v39 = vpop.f32.mrb[80].mxu1 }
 0x5e4   : > { %v1760_v51 = vadd.f32 %v1759_v39, %v4155_v45  ;;  %v1761_v52 = vpop.f32.mrb[81].mxu1 }
 0x5e5   : > { %v1762_v53 = vadd.f32 %v1761_v52, %v4158_v46  ;;  %v1763_v54 = vpop.f32.mrb[82].mxu1  ;;  %2100 = vmatprep.mubr.bf16.mxu0 %v1837_v38 }
 0x5e6   : > { %v1764_v55 = vadd.f32 %v1763_v54, %v4155_v45  ;;  %v1765_v56 = vpop.f32.mrb[83].mxu1  ;;  %2101 = vmatmul.mubr.bf16.gmra.mrb[92].mxu0 %v1836_v50  ;;  %v1814_v58 = vmax.f32 %v1760_v51, 0.0 }
 0x5e7   : > { %v1766_v57 = vadd.f32 %v1765_v56, %v4158_v46  ;;  %v1815_v60 = vmax.f32 %v1762_v53, 0.0  ;;  %v3460_v56 = vld [vmem:[%s4461_s6 + $0x8] sm:$0xff]  }
 0x5e8   : > { %v1816_v59 = vmax.f32 %v1764_v55, 0.0  ;;  %v3457_v55 = vld [vmem:[%s4461_s6 + $0x40] sm:$0xff]  }
 0x5e9   : > { %v1817_v61 = vmax.f32 %v1766_v57, 0.0  ;;  %3120 = vmatprep.subr.bf16.mxu0 %v3457_v55  ;;  %v3461_v57 = vld [vmem:[%s4461_s6 + $0x50] sm:$0xff]  }
 0x5ea   : > { %v1838_v62 = vpack.c.bf16 %v1816_v59, %v1814_v58 }
 0x5eb   : > { %v1839_v63 = vpack.c.bf16 %v1817_v61, %v1815_v60  ;;  %v1769_v0 = vpop.f32.mrb[84].mxu1  ;;  %v3462_v60 = vld [vmem:[%s4461_s6 + $0x10] sm:$0xff]  }
 0x5ec   : > { %v1770_v1 = vadd.f32 %v1769_v0, %v4155_v45  ;;  %v1771_v2 = vpop.f32.mrb[85].mxu1 }
 0x5ed   : > { %v1772_v3 = vadd.f32 %v1771_v2, %v4158_v46  ;;  %v1773_v4 = vpop.f32.mrb[86].mxu1  ;;  %2110 = vmatprep.mubr.bf16.mxu0 %v1839_v63  ;;  %v3464_v2 = vld [vmem:[%s4461_s6 + $0x18] sm:$0xff]  }
 0x5ee   : > { %v1774_v5 = vadd.f32 %v1773_v4, %v4155_v45  ;;  %v1775_v6 = vpop.f32.mrb[87].mxu1  ;;  %2111 = vmatmul.mubr.bf16.gmra.mrb[96].mxu0 %v1838_v62  ;;  %v1818_v24 = vmax.f32 %v1770_v1, 0.0  ;;  %v3463_v62 = vld [vmem:[%s4461_s6 + $0x58] sm:$0xff]  }
 0x5ef   : > { %v1776_v23 = vadd.f32 %v1775_v6, %v4158_v46  ;;  %v1819_v26 = vmax.f32 %v1772_v3, 0.0  ;;  %v3465_v3 = vld [vmem:[%s4461_s6 + $0x60] sm:$0xff]  }
 0x5f0   : > { %v1820_v25 = vmax.f32 %v1774_v5, 0.0  ;;  %v3466_v6 = vld [vmem:[%s4461_s6 + $0x20] sm:$0xff]  }
 0x5f1   : > { %v1821_v28 = vmax.f32 %v1776_v23, 0.0 }
 0x5f2   : > { %v1840_v29 = vpack.c.bf16 %v1820_v25, %v1818_v24  ;;  %v3467_v24 = vld [vmem:[%s4461_s6 + $0x68] sm:$0xff]  }
 0x5f3   : > { %v1841_v27 = vpack.c.bf16 %v1821_v28, %v1819_v26  ;;  %v1779_v8 = vpop.f32.mrb[88].mxu1 }
 0x5f4   : > { %v1780_v9 = vadd.f32 %v1779_v8, %v4155_v45  ;;  %v1781_v10 = vpop.f32.mrb[89].mxu1 }
 0x5f5   : > { %v1782_v11 = vadd.f32 %v1781_v10, %v4158_v46  ;;  %v1783_v12 = vpop.f32.mrb[90].mxu1  ;;  %2120 = vmatprep.mubr.bf16.mxu0 %v1841_v27  ;;  %v3469_v27 = vld [vmem:[%s4461_s6 + $0x70] sm:$0xff]  }
 0x5f6   : > { %v1784_v13 = vadd.f32 %v1783_v12, %v4155_v45  ;;  %v1785_v14 = vpop.f32.mrb[91].mxu1  ;;  %2121 = vmatmul.mubr.bf16.gmra.mrb[100].mxu0 %v1840_v29  ;;  %v1822_v16 = vmax.f32 %v1780_v9, 0.0  ;;  %v3468_v29 = vld [vmem:[%s4461_s6 + $0x28] sm:$0xff]  }
 0x5f7   : > { %v1786_v15 = vadd.f32 %v1785_v14, %v4158_v46  ;;  %v1823_v18 = vmax.f32 %v1782_v11, 0.0 }
 0x5f8   : > { %v1824_v17 = vmax.f32 %v1784_v13, 0.0 }
 0x5f9   : > { %v1825_v19 = vmax.f32 %v1786_v15, 0.0 }
 0x5fa   : > { %v1842_v20 = vpack.c.bf16 %v1824_v17, %v1822_v16 }
 0x5fb   : > { %v1843_v40 = vpack.c.bf16 %v1825_v19, %v1823_v18  ;;  %v1789_v41 = vpop.f32.mrb[92].mxu1 }
 0x5fc   : > { %v1790_v42 = vadd.f32 %v1789_v41, %v4155_v45  ;;  %v1791_v43 = vpop.f32.mrb[93].mxu1 }
 0x5fd   : > { %v1792_v44 = vadd.f32 %v1791_v43, %v4158_v46  ;;  %v1793_v47 = vpop.f32.mrb[94].mxu1  ;;  %2130 = vmatprep.mubr.bf16.mxu0 %v1843_v40 }
 0x5fe   : > { %v1794_v48 = vadd.f32 %v1793_v47, %v4155_v45  ;;  %v1795_v49 = vpop.f32.mrb[95].mxu1  ;;  %2131 = vmatmul.mubr.bf16.gmra.mrb[104].mxu0 %v1842_v20  ;;  %v1826_v38 = vmax.f32 %v1790_v42, 0.0  ;;  %v3458_v45 = vld [vmem:[%s4461_s6] sm:$0xff]  }
 0x5ff   : > { %v1796_v50 = vadd.f32 %v1795_v49, %v4158_v46  ;;  %v1827_v51 = vmax.f32 %v1792_v44, 0.0  ;;  %v3459_v46 = vld [vmem:[%s4461_s6 + $0x48] sm:$0xff]   ;;  %3121 = vmatpush3.bf16.msra.mxu0 %v3458_v45 }
 0x600   : > { %v1828_v39 = vmax.f32 %v1794_v48, 0.0  ;;  %3122 = vmatprep.subr.bf16.mxu0 %v3459_v46 }
 0x601   : > { %v1829_v52 = vmax.f32 %v1796_v50, 0.0 }
 0x602   : > { %v1844_v53 = vpack.c.bf16 %v1828_v39, %v1826_v38 }
 0x603   : > { %v1845_v54 = vpack.c.bf16 %v1829_v52, %v1827_v51  ;;  %3123 = vmatpush3.bf16.msra.mxu0 %v3460_v56 }
 0x604   : > { %3124 = vmatprep.subr.bf16.mxu0 %v3461_v57 }
 0x605   : > { %2140 = vmatprep.mubr.bf16.mxu0 %v1845_v54 }
 0x606   : > { %2141 = vmatmul.mubr.bf16.gmra.mrb[108].mxu0 %v1844_v53 }
 0x607   : > { %3125 = vmatpush3.bf16.msra.mxu0 %v3462_v60 }
 0x608   : > { %3126 = vmatprep.subr.bf16.mxu0 %v3463_v62  ;;  %v3470_v62 = vld [vmem:[%s4461_s6 + $0x30] sm:$0xff]  }
 0x60b   : > { %3127 = vmatpush3.bf16.msra.mxu0 %v3464_v2 }
 0x60c   : > { %3128 = vmatprep.subr.bf16.mxu0 %v3465_v3 }
 0x60f   : > { %3129 = vmatpush3.bf16.msra.mxu0 %v3466_v6 }
 0x610   : > { %3130 = vmatprep.subr.bf16.mxu0 %v3467_v24 }
 0x613   : > { %3131 = vmatpush3.bf16.msra.mxu0 %v3468_v29 }
 0x614   : > { %3132 = vmatprep.subr.bf16.mxu0 %v3469_v27 }
 0x617   : > { %3133 = vmatpush3.bf16.msra.mxu0 %v3470_v62 }
 0x6a1   : > { %v2072_v58 = vpop.f32.mrb[80].mxu0 }
 0x6a2   : > { %v2074_v59 = vpop.f32.mrb[81].mxu0 }
 0x6a3   : > { %v2076_v61 = vpop.f32.mrb[82].mxu0 }
 0x6a4   : > { %v2151_v63 = vpack.c.bf16 %v2076_v61, %v2072_v58  ;;  %v2078_v0 = vpop.f32.mrb[83].mxu0  ;;  %v3545_v61 = vld [vmem:[%s3648_s12] sm:$0xff]  }
 0x6a5   : > { %v2152_v1 = vpack.c.bf16 %v2078_v0, %v2074_v59  ;;  %v3472_v0 = vld [vmem:[%s4461_s6 + $0x38] sm:$0xff]  }
 0x6a7   : > { %2180 = vmatprep.subr.bf16.mxu1 %v2152_v1 }
 0x6a8   : > { %2181 = vmatpush1.bf16.msra.mxu1 %v2151_v63  ;;  %v3471_v63 = vld [vmem:[%s4461_s6 + $0x78] sm:$0xff]  }
 0x6a9   : > { %v2082_v4 = vpop.f32.mrb[84].mxu0  ;;  %3134 = vmatprep.subr.bf16.mxu0 %v3471_v63 }
 0x6aa   : > { %v2084_v5 = vpop.f32.mrb[85].mxu0  ;;  %3135 = vmatpush3.bf16.msra.mxu0 %v3472_v0 }
 0x6ab   : > { %v2086_v23 = vpop.f32.mrb[86].mxu0 }
 0x6ac   : > { %v2153_v25 = vpack.c.bf16 %v2086_v23, %v2082_v4  ;;  %v2088_v26 = vpop.f32.mrb[87].mxu0 }
 0x6ad   : > { %v2154_v28 = vpack.c.bf16 %v2088_v26, %v2084_v5 }
 0x6af   : > { %2182 = vmatprep.subr.bf16.mxu1 %v2154_v28 }
 0x6b0   : > { %2183 = vmatpush1.bf16.msra.mxu1 %v2153_v25 }
 0x6b1   : > { %v2092_v8 = vpop.f32.mrb[88].mxu0 }
 0x6b2   : > { %v2094_v9 = vpop.f32.mrb[89].mxu0 }
 0x6b3   : > { %v2096_v10 = vpop.f32.mrb[90].mxu0 }
 0x6b4   : > { %v2155_v11 = vpack.c.bf16 %v2096_v10, %v2092_v8  ;;  %v2098_v12 = vpop.f32.mrb[91].mxu0 }
 0x6b5   : > { %v2156_v13 = vpack.c.bf16 %v2098_v12, %v2094_v9 }
 0x6b7   : > { %2184 = vmatprep.subr.bf16.mxu1 %v2156_v13 }
 0x6b8   : > { %2185 = vmatpush1.bf16.msra.mxu1 %v2155_v11 }
 0x6b9   : > { %v2102_v14 = vpop.f32.mrb[92].mxu0 }
 0x6ba   : > { %v2104_v15 = vpop.f32.mrb[93].mxu0 }
 0x6bb   : > { %v2106_v16 = vpop.f32.mrb[94].mxu0 }
 0x6bc   : > { %v2157_v17 = vpack.c.bf16 %v2106_v16, %v2102_v14  ;;  %v2108_v18 = vpop.f32.mrb[95].mxu0 }
 0x6bd   : > { %v2158_v19 = vpack.c.bf16 %v2108_v18, %v2104_v15 }
 0x6bf   : > { %2186 = vmatprep.subr.bf16.mxu1 %v2158_v19 }
 0x6c0   : > { %2187 = vmatpush1.bf16.msra.mxu1 %v2157_v17 }
 0x6c1   : > { %v2112_v20 = vpop.f32.mrb[96].mxu0 }
 0x6c2   : > { %v2114_v40 = vpop.f32.mrb[97].mxu0 }
 0x6c3   : > { %v2116_v41 = vpop.f32.mrb[98].mxu0 }
 0x6c4   : > { %v2159_v42 = vpack.c.bf16 %v2116_v41, %v2112_v20  ;;  %v2118_v43 = vpop.f32.mrb[99].mxu0 }
 0x6c5   : > { %v2160_v44 = vpack.c.bf16 %v2118_v43, %v2114_v40 }
 0x6c7   : > { %2188 = vmatprep.subr.bf16.mxu1 %v2160_v44 }
 0x6c8   : > { %2189 = vmatpush1.bf16.msra.mxu1 %v2159_v42 }
 0x6c9   : > { %v2122_v47 = vpop.f32.mrb[100].mxu0 }
 0x6ca   : > { %v2124_v48 = vpop.f32.mrb[101].mxu0 }
 0x6cb   : > { %v2126_v49 = vpop.f32.mrb[102].mxu0 }
 0x6cc   : > { %v2161_v50 = vpack.c.bf16 %v2126_v49, %v2122_v47  ;;  %v2128_v38 = vpop.f32.mrb[103].mxu0 }
 0x6cd   : > { %v2162_v39 = vpack.c.bf16 %v2128_v38, %v2124_v48 }
 0x6cf   : > { %2190 = vmatprep.subr.bf16.mxu1 %v2162_v39 }
 0x6d0   : > { %2191 = vmatpush1.bf16.msra.mxu1 %v2161_v50 }
 0x6d1   : > { %v2132_v51 = vpop.f32.mrb[104].mxu0 }
 0x6d2   : > { %v2134_v52 = vpop.f32.mrb[105].mxu0 }
 0x6d3   : > { %v2136_v53 = vpop.f32.mrb[106].mxu0 }
 0x6d4   : > { %v2163_v54 = vpack.c.bf16 %v2136_v53, %v2132_v51  ;;  %v2138_v55 = vpop.f32.mrb[107].mxu0 }
 0x6d5   : > { %v2164_v45 = vpack.c.bf16 %v2138_v55, %v2134_v52 }
 0x6d7   : > { %2192 = vmatprep.subr.bf16.mxu1 %v2164_v45 }
 0x6d8   : > { %2193 = vmatpush1.bf16.msra.mxu1 %v2163_v54 }
 0x6d9   : > { %v2142_v46 = vpop.f32.mrb[108].mxu0 }
 0x6da   : > { %v2144_v56 = vpop.f32.mrb[109].mxu0 }
 0x6db   : > { %v2146_v57 = vpop.f32.mrb[110].mxu0 }
 0x6dc   : > { %v2165_v58 = vpack.c.bf16 %v2146_v57, %v2142_v46  ;;  %v2148_v59 = vpop.f32.mrb[111].mxu0 }
 0x6dd   : > { %v2166_v60 = vpack.c.bf16 %v2148_v59, %v2144_v56 }
 0x6df   : > { %2194 = vmatprep.subr.bf16.mxu1 %v2166_v60 }
 0x6e0   : > { %2195 = vmatpush1.bf16.msra.mxu1 %v2165_v58 }
 0x6e3   : > { %2213 = vmatmul.mubr.bf16.vlgmr.msra.gmra.mrb[96].mxu1 %v3545_v61 }
 0x6e4   : > { %2222 = vmatprep.mubr.bf16.mxu1 %v3554_v32 }
 0x6eb   : > { %2223 = vmatmul.mubr.bf16.gmra.mrb[100].mxu1 %v4105_v21 }
 0x6ec   : > { %2232 = vmatprep.mubr.bf16.mxu1 %v3554_v32 }
 0x6f3   : > { %2233 = vmatmul.mubr.bf16.gmra.mrb[104].mxu1 %v4110_v22 }
 0x6f4   : > { %2242 = vmatprep.mubr.bf16.mxu1 %v3554_v32 }
 0x6fb   : > { %2243 = vmatmul.mubr.bf16.gmra.mrb[108].mxu1 %v4115_v30 }
 0x6fc   : > { %2252 = vmatprep.mubr.bf16.mxu1 %v3554_v32 }
 0x703   : > { %2253 = vmatmul.mubr.bf16.gmra.mrb[112].mxu1 %v4120_v7 }
 0x704   : > { %2262 = vmatprep.mubr.bf16.mxu1 %v3554_v32 }
 0x70b   : > { %2263 = vmatmul.mubr.bf16.gmra.mrb[116].mxu1 %v4125_v31 }
 0x70c   : > { %2272 = vmatprep.mubr.bf16.mxu1 %v3554_v32 }
 0x713   : > { %2273 = vmatmul.mubr.bf16.gmra.mrb[120].mxu1 %v4130_v34 }
 0x714   : > { %2282 = vmatprep.mubr.bf16.mxu1 %v3554_v32  ;;  %v3081_v32 = vld [vmem:[%s4462_s7 + $0x3] ss:$4 sm:$0x3] }
 0x715   : > { %v4259_v1 = vrot.slane %v3081_v32, %v3817_v35  ;;  %v4262_v2 = vrot.slane %v3081_v32, %v3822_v37 }
 0x71b   : > { %2283 = vmatmul.mubr.bf16.gmra.mrb[124].mxu1 %v4135_v36 }
 0x71c   : > { %3248 = vmatprep.mubr.bf16.mxu1 %v3545_v61 }
 0x7b6   : > { %v2214_v3 = vpop.f32.mrb[96].mxu1 }
 0x7b7   : > { %v2215_v4 = vadd.f32 %v2214_v3, %v4259_v1  ;;  %v2216_v5 = vpop.f32.mrb[97].mxu1 }
 0x7b8   : > { %v2217_v6 = vadd.f32 %v2216_v5, %v4262_v2  ;;  %v2218_v23 = vpop.f32.mrb[98].mxu1 }
 0x7b9   : > { %v2219_v24 = vadd.f32 %v2218_v23, %v4259_v1  ;;  %v2220_v25 = vpop.f32.mrb[99].mxu1  ;;  %v2293_v28 = vmax.f32 %v2215_v4, 0.0 }
 0x7ba   : > { %v2221_v26 = vadd.f32 %v2220_v25, %v4262_v2  ;;  %v2294_v27 = vmax.f32 %v2217_v6, 0.0 }
 0x7bb   : > { %v2295_v29 = vmax.f32 %v2219_v24, 0.0 }
 0x7bc   : > { %v2296_v35 = vmax.f32 %v2221_v26, 0.0 }
 0x7bd   : > { %v2325_v8 = vpack.c.bf16 %v2295_v29, %v2293_v28 }
 0x7be   : > { %v2326_v9 = vpack.c.bf16 %v2296_v35, %v2294_v27  ;;  %v2224_v37 = vpop.f32.mrb[100].mxu1 }
 0x7bf   : > { %v2225_v10 = vadd.f32 %v2224_v37, %v4259_v1  ;;  %v2226_v11 = vpop.f32.mrb[101].mxu1 }
 0x7c0   : > { %v2227_v12 = vadd.f32 %v2226_v11, %v4262_v2  ;;  %v2228_v13 = vpop.f32.mrb[102].mxu1  ;;  %2501 = vmatprep.mubr.bf16.mxu0 %v2326_v9 }
 0x7c1   : > { %v2229_v14 = vadd.f32 %v2228_v13, %v4259_v1  ;;  %v2230_v15 = vpop.f32.mrb[103].mxu1  ;;  %2502 = vmatmul.mubr.bf16.vlgmr.msra.gmra.mrb[112].mxu0 %v2325_v8  ;;  %v2297_v17 = vmax.f32 %v2225_v10, 0.0 }
 0x7c2   : > { %v2231_v16 = vadd.f32 %v2230_v15, %v4262_v2  ;;  %v2298_v19 = vmax.f32 %v2227_v12, 0.0 }
 0x7c3   : > { %v2299_v18 = vmax.f32 %v2229_v14, 0.0 }
 0x7c4   : > { %v2300_v20 = vmax.f32 %v2231_v16, 0.0 }
 0x7c5   : > { %v2327_v40 = vpack.c.bf16 %v2299_v18, %v2297_v17 }
 0x7c6   : > { %v2328_v41 = vpack.c.bf16 %v2300_v20, %v2298_v19  ;;  %v2234_v42 = vpop.f32.mrb[104].mxu1 }
 0x7c7   : > { %v2235_v43 = vadd.f32 %v2234_v42, %v4259_v1  ;;  %v2236_v44 = vpop.f32.mrb[105].mxu1 }
 0x7c8   : > { %v2237_v47 = vadd.f32 %v2236_v44, %v4262_v2  ;;  %v2238_v48 = vpop.f32.mrb[106].mxu1  ;;  %2509 = vmatprep.mubr.bf16.mxu0 %v2328_v41 }
 0x7c9   : > { %v2239_v49 = vadd.f32 %v2238_v48, %v4259_v1  ;;  %v2240_v50 = vpop.f32.mrb[107].mxu1  ;;  %2510 = vmatmul.mubr.bf16.gmra.mrb[116].mxu0 %v2327_v40  ;;  %v2301_v39 = vmax.f32 %v2235_v43, 0.0 }
 0x7ca   : > { %v2241_v38 = vadd.f32 %v2240_v50, %v4262_v2  ;;  %v2302_v52 = vmax.f32 %v2237_v47, 0.0 }
 0x7cb   : > { %v2303_v51 = vmax.f32 %v2239_v49, 0.0 }
 0x7cc   : > { %v2304_v53 = vmax.f32 %v2241_v38, 0.0 }
 0x7cd   : > { %v2329_v54 = vpack.c.bf16 %v2303_v51, %v2301_v39 }
 0x7ce   : > { %v2330_v55 = vpack.c.bf16 %v2304_v53, %v2302_v52  ;;  %v2244_v45 = vpop.f32.mrb[108].mxu1 }
 0x7cf   : > { %v2245_v46 = vadd.f32 %v2244_v45, %v4259_v1  ;;  %v2246_v56 = vpop.f32.mrb[109].mxu1 }
 0x7d0   : > { %v2247_v57 = vadd.f32 %v2246_v56, %v4262_v2  ;;  %v2248_v58 = vpop.f32.mrb[110].mxu1  ;;  %2517 = vmatprep.mubr.bf16.mxu0 %v2330_v55 }
 0x7d1   : > { %v2249_v59 = vadd.f32 %v2248_v58, %v4259_v1  ;;  %v2250_v60 = vpop.f32.mrb[111].mxu1  ;;  %2518 = vmatmul.mubr.bf16.gmra.mrb[120].mxu0 %v2329_v54  ;;  %v2305_v62 = vmax.f32 %v2245_v46, 0.0 }
 0x7d2   : > { %v2251_v61 = vadd.f32 %v2250_v60, %v4262_v2  ;;  %v2306_v0 = vmax.f32 %v2247_v57, 0.0 }
 0x7d3   : > { %v2307_v63 = vmax.f32 %v2249_v59, 0.0 }
 0x7d4   : > { %v2308_v32 = vmax.f32 %v2251_v61, 0.0 }
 0x7d5   : > { %v2331_v3 = vpack.c.bf16 %v2307_v63, %v2305_v62 }
 0x7d6   : > { %v2332_v4 = vpack.c.bf16 %v2308_v32, %v2306_v0  ;;  %v2254_v5 = vpop.f32.mrb[112].mxu1 }
 0x7d7   : > { %v2255_v6 = vadd.f32 %v2254_v5, %v4259_v1  ;;  %v2256_v23 = vpop.f32.mrb[113].mxu1 }
 0x7d8   : > { %v2257_v24 = vadd.f32 %v2256_v23, %v4262_v2  ;;  %v2258_v25 = vpop.f32.mrb[114].mxu1  ;;  %2525 = vmatprep.mubr.bf16.mxu0 %v2332_v4 }
 0x7d9   : > { %v2259_v26 = vadd.f32 %v2258_v25, %v4259_v1  ;;  %v2260_v28 = vpop.f32.mrb[115].mxu1  ;;  %2526 = vmatmul.mubr.bf16.gmra.mrb[124].mxu0 %v2331_v3  ;;  %v2309_v27 = vmax.f32 %v2255_v6, 0.0 }
 0x7da   : > { %v2261_v29 = vadd.f32 %v2260_v28, %v4262_v2  ;;  %v2310_v8 = vmax.f32 %v2257_v24, 0.0 }
 0x7db   : > { %v2311_v35 = vmax.f32 %v2259_v26, 0.0 }
 0x7dc   : > { %v2312_v9 = vmax.f32 %v2261_v29, 0.0 }
 0x7dd   : > { %v2333_v37 = vpack.c.bf16 %v2311_v35, %v2309_v27 }
 0x7de   : > { %v2334_v10 = vpack.c.bf16 %v2312_v9, %v2310_v8  ;;  %v2264_v11 = vpop.f32.mrb[116].mxu1 }
 0x7df   : > { %v2265_v12 = vadd.f32 %v2264_v11, %v4259_v1  ;;  %v2266_v13 = vpop.f32.mrb[117].mxu1 }
 0x7e0   : > { %v2267_v14 = vadd.f32 %v2266_v13, %v4262_v2  ;;  %v2268_v15 = vpop.f32.mrb[118].mxu1  ;;  %2533 = vmatprep.mubr.bf16.mxu0 %v2334_v10 }
 0x7e1   : > { %v2269_v16 = vadd.f32 %v2268_v15, %v4259_v1  ;;  %v2270_v17 = vpop.f32.mrb[119].mxu1  ;;  %2534 = vmatmul.mubr.bf16.gmra.mrb[128].mxu0 %v2333_v37  ;;  %v2313_v19 = vmax.f32 %v2265_v12, 0.0 }
 0x7e2   : > { %v2271_v18 = vadd.f32 %v2270_v17, %v4262_v2  ;;  %v2314_v40 = vmax.f32 %v2267_v14, 0.0 }
 0x7e3   : > { %v2315_v20 = vmax.f32 %v2269_v16, 0.0 }
 0x7e4   : > { %v2316_v41 = vmax.f32 %v2271_v18, 0.0 }
 0x7e5   : > { %v2335_v42 = vpack.c.bf16 %v2315_v20, %v2313_v19 }
 0x7e6   : > { %v2336_v43 = vpack.c.bf16 %v2316_v41, %v2314_v40  ;;  %v2274_v44 = vpop.f32.mrb[120].mxu1 }
 0x7e7   : > { %v2275_v47 = vadd.f32 %v2274_v44, %v4259_v1  ;;  %v2276_v48 = vpop.f32.mrb[121].mxu1 }
 0x7e8   : > { %v2277_v49 = vadd.f32 %v2276_v48, %v4262_v2  ;;  %v2278_v50 = vpop.f32.mrb[122].mxu1  ;;  %2541 = vmatprep.mubr.bf16.mxu0 %v2336_v43 }
 0x7e9   : > { %v2279_v38 = vadd.f32 %v2278_v50, %v4259_v1  ;;  %v2280_v39 = vpop.f32.mrb[123].mxu1  ;;  %2542 = vmatmul.mubr.bf16.gmra.mrb[132].mxu0 %v2335_v42  ;;  %v2317_v52 = vmax.f32 %v2275_v47, 0.0 }
 0x7ea   : > { %v2281_v51 = vadd.f32 %v2280_v39, %v4262_v2  ;;  %v2318_v54 = vmax.f32 %v2277_v49, 0.0 }
 0x7eb   : > { %v2319_v53 = vmax.f32 %v2279_v38, 0.0 }
 0x7ec   : > { %v2320_v55 = vmax.f32 %v2281_v51, 0.0 }
 0x7ed   : > { %v2337_v45 = vpack.c.bf16 %v2319_v53, %v2317_v52 }
 0x7ee   : > { %v2338_v46 = vpack.c.bf16 %v2320_v55, %v2318_v54  ;;  %v2284_v56 = vpop.f32.mrb[124].mxu1 }
 0x7ef   : > { %v2285_v57 = vadd.f32 %v2284_v56, %v4259_v1  ;;  %v2286_v58 = vpop.f32.mrb[125].mxu1 }
 0x7f0   : > { %v2287_v59 = vadd.f32 %v2286_v58, %v4262_v2  ;;  %v2288_v60 = vpop.f32.mrb[126].mxu1  ;;  %2549 = vmatprep.mubr.bf16.mxu0 %v2338_v46 }
 0x7f1   : > { %v2289_v61 = vadd.f32 %v2288_v60, %v4259_v1  ;;  %v2290_v62 = vpop.f32.mrb[127].mxu1  ;;  %2550 = vmatmul.mubr.bf16.gmra.mrb[136].mxu0 %v2337_v45  ;;  %v2321_v0 = vmax.f32 %v2285_v57, 0.0 }
 0x7f2   : > { %v2291_v63 = vadd.f32 %v2290_v62, %v4262_v2  ;;  %v2322_v3 = vmax.f32 %v2287_v59, 0.0 }
 0x7f3   : > { %v2323_v32 = vmax.f32 %v2289_v61, 0.0 }
 0x7f4   : > { %v2324_v4 = vmax.f32 %v2291_v63, 0.0 }
 0x7f5   : > { %v2339_v5 = vpack.c.bf16 %v2323_v32, %v2321_v0 }
 0x7f6   : > { %v2340_v6 = vpack.c.bf16 %v2324_v4, %v2322_v3 }
 0x7f8   : > { %2557 = vmatprep.mubr.bf16.mxu0 %v2340_v6 }
 0x7f9   : > { %2558 = vmatmul.mubr.bf16.gmra.mrb[140].mxu0 %v2339_v5 }
 0x894   : > { %v3136_v23 = vpop.f32.mrb[112].mxu0 }
 0x895   : > { %v3137_v24 = vpop.f32.mrb[113].mxu0 }
 0x896   : > { %v3138_v25 = vadd.f32 %v3137_v24, %v3136_v23  ;;  %v3139_v26 = vpop.f32.mrb[114].mxu0  ;;  %v4304_v23 = vand.u32 127, %v605_v33  ;;  %v3098_v24 = vld [vmem:[%s4463_s8] ss:$0 sm:$0xff] }
 0x897   : > { %v3140_v28 = vpop.f32.mrb[115].mxu0 }
 0x898   : > { %v3141_v29 = vadd.f32 %v3140_v28, %v3139_v26  ;;  %vm2680_vm0 = vcmp.lt.s32.totalorder %v4304_v23, 32 }
 0x89a   : > { %v2566_v27 = vpack.c.bf16 %v3141_v29, %v3138_v25 }
 0x89c   : > { %v3142_v1 = vpop.f32.mrb[116].mxu0  ;;  %3232 = vmatprep.subr.bf16.mxu1 %v2566_v27 }
 0x89d   : > { %v3143_v35 = vpop.f32.mrb[117].mxu0  ;;  %3233 = vmatpush3.bf16.msra.mxu1 %v2566_v27 }
 0x89e   : > { %v3144_v2 = vadd.f32 %v3143_v35, %v3142_v1  ;;  %v3145_v8 = vpop.f32.mrb[118].mxu0 }
 0x89f   : > { %v3146_v9 = vpop.f32.mrb[119].mxu0 }
 0x8a0   : > { %v3147_v37 = vadd.f32 %v3146_v9, %v3145_v8 }
 0x8a2   : > { %v2567_v10 = vpack.c.bf16 %v3147_v37, %v3144_v2 }
 0x8a4   : > { %v3148_v11 = vpop.f32.mrb[120].mxu0  ;;  %3234 = vmatprep.subr.bf16.mxu1 %v2567_v10 }
 0x8a5   : > { %v3149_v12 = vpop.f32.mrb[121].mxu0  ;;  %3235 = vmatpush3.bf16.msra.mxu1 %v2567_v10 }
 0x8a6   : > { %v3150_v13 = vadd.f32 %v3149_v12, %v3148_v11  ;;  %v3151_v14 = vpop.f32.mrb[122].mxu0 }
 0x8a7   : > { %v3152_v15 = vpop.f32.mrb[123].mxu0 }
 0x8a8   : > { %v3153_v16 = vadd.f32 %v3152_v15, %v3151_v14 }
 0x8aa   : > { %v2568_v17 = vpack.c.bf16 %v3153_v16, %v3150_v13 }
 0x8ac   : > { %v3154_v18 = vpop.f32.mrb[124].mxu0  ;;  %3236 = vmatprep.subr.bf16.mxu1 %v2568_v17 }
 0x8ad   : > { %v3155_v19 = vpop.f32.mrb[125].mxu0  ;;  %3237 = vmatpush3.bf16.msra.mxu1 %v2568_v17 }
 0x8ae   : > { %v3156_v20 = vadd.f32 %v3155_v19, %v3154_v18  ;;  %v3157_v40 = vpop.f32.mrb[126].mxu0 }
 0x8af   : > { %v3158_v41 = vpop.f32.mrb[127].mxu0 }
 0x8b0   : > { %v3159_v42 = vadd.f32 %v3158_v41, %v3157_v40 }
 0x8b2   : > { %v2569_v43 = vpack.c.bf16 %v3159_v42, %v3156_v20 }
 0x8b4   : > { %v3160_v44 = vpop.f32.mrb[128].mxu0  ;;  %3238 = vmatprep.subr.bf16.mxu1 %v2569_v43 }
 0x8b5   : > { %v3161_v47 = vpop.f32.mrb[129].mxu0  ;;  %3239 = vmatpush3.bf16.msra.mxu1 %v2569_v43 }
 0x8b6   : > { %v3162_v48 = vadd.f32 %v3161_v47, %v3160_v44  ;;  %v3163_v49 = vpop.f32.mrb[130].mxu0 }
 0x8b7   : > { %v3164_v50 = vpop.f32.mrb[131].mxu0 }
 0x8b8   : > { %v3165_v38 = vadd.f32 %v3164_v50, %v3163_v49 }
 0x8ba   : > { %v2570_v39 = vpack.c.bf16 %v3165_v38, %v3162_v48 }
 0x8bc   : > { %v3166_v51 = vpop.f32.mrb[132].mxu0  ;;  %3240 = vmatprep.subr.bf16.mxu1 %v2570_v39 }
 0x8bd   : > { %v3167_v52 = vpop.f32.mrb[133].mxu0  ;;  %3241 = vmatpush3.bf16.msra.mxu1 %v2570_v39 }
 0x8be   : > { %v3168_v53 = vadd.f32 %v3167_v52, %v3166_v51  ;;  %v3169_v54 = vpop.f32.mrb[134].mxu0 }
 0x8bf   : > { %v3170_v55 = vpop.f32.mrb[135].mxu0 }
 0x8c0   : > { %v3171_v45 = vadd.f32 %v3170_v55, %v3169_v54 }
 0x8c2   : > { %v2571_v46 = vpack.c.bf16 %v3171_v45, %v3168_v53 }
 0x8c4   : > { %v3172_v56 = vpop.f32.mrb[136].mxu0  ;;  %3242 = vmatprep.subr.bf16.mxu1 %v2571_v46 }
 0x8c5   : > { %v3173_v57 = vpop.f32.mrb[137].mxu0  ;;  %3243 = vmatpush3.bf16.msra.mxu1 %v2571_v46 }
 0x8c6   : > { %v3174_v58 = vadd.f32 %v3173_v57, %v3172_v56  ;;  %v3175_v59 = vpop.f32.mrb[138].mxu0 }
 0x8c7   : > { %v3176_v60 = vpop.f32.mrb[139].mxu0 }
 0x8c8   : > { %v3177_v61 = vadd.f32 %v3176_v60, %v3175_v59 }
 0x8ca   : > { %v2572_v62 = vpack.c.bf16 %v3177_v61, %v3174_v58 }
 0x8cc   : > { %v3178_v63 = vpop.f32.mrb[140].mxu0  ;;  %3244 = vmatprep.subr.bf16.mxu1 %v2572_v62 }
 0x8cd   : > { %v3179_v0 = vpop.f32.mrb[141].mxu0  ;;  %3245 = vmatpush3.bf16.msra.mxu1 %v2572_v62 }
 0x8ce   : > { %v3180_v32 = vadd.f32 %v3179_v0, %v3178_v63  ;;  %v3181_v3 = vpop.f32.mrb[142].mxu0 }
 0x8cf   : > { %v3182_v4 = vpop.f32.mrb[143].mxu0 }
 0x8d0   : > { %v3183_v5 = vadd.f32 %v3182_v4, %v3181_v3 }
 0x8d2   : > { %v2573_v6 = vpack.c.bf16 %v3183_v5, %v3180_v32 }
 0x8d4   : > { %3246 = vmatprep.subr.bf16.mxu1 %v2573_v6 }
 0x8d5   : > { %3247 = vmatpush3.bf16.msra.mxu1 %v2573_v6 }
 0x8d8   : > { %3249 = vmatmul.mubr.bf16.vlgmr.msra.gmra.mrb[128].mxu1 %v4105_v21 }
 0x8d9   : > { %3252 = vmatprep.mubr.bf16.mxu1 %v4110_v22 }
 0x8e0   : > { %3253 = vmatmul.mubr.bf16.gmra.mrb[132].mxu1 %v4115_v30 }
 0x8e1   : > { %3256 = vmatprep.mubr.bf16.mxu1 %v4120_v7 }
 0x8e8   : > { %3257 = vmatmul.mubr.bf16.gmra.mrb[136].mxu1 %v4125_v31 }
 0x8e9   : > { %3260 = vmatprep.mubr.bf16.mxu1 %v4130_v34 }
 0x8f0   : > { %3261 = vmatmul.mubr.bf16.gmra.mrb[140].mxu1 %v4135_v36 }
 0x9ab   : > { %v3250_v21 = vpop.f32.mrb[128].mxu1 }
 0x9ac   : > { %v2624_v22 = vadd.f32 %v3250_v21, %v3098_v24  ;;  %v2615_v30 = vpop.f32.mrb[129].mxu1 }
 0x9ad   : > { %v2616_v25 = vadd.f32 %v3098_v24, %v2615_v30  ;;  %v3251_v7 = vpop.f32.mrb[130].mxu1 }
 0x9ae   : > { %v2683_v31 = vsel %vm2680_vm0, %v2624_v22, -1e+30  ;;  %v2627_v34 = vadd.f32 %v3251_v7, %v3098_v24  ;;  %v2618_v26 = vpop.f32.mrb[131].mxu1 }
 0x9af   : > { %2701 = vmax.xlane.f32.xlu1 %v2683_v31  ;;  %v2619_v36 = vadd.f32 %v3098_v24, %v2618_v26  ;;  %v2681_v33 = vsel %vm2680_vm0, %v2616_v25, -1e+30 }
 0x9b0   : > { %2697 = vmax.xlane.f32.xlu0 %v2681_v33  ;;  %v2684_v28 = vsel %vm2680_vm0, %v2627_v34, -1e+30 }
 0x9b1   : > { %v2682_v27 = vsel %vm2680_vm0, %v2619_v36, -1e+30 }
 0x9b3   : > { %2703 = vmax.xlane.f32.xlu1 %v2684_v28  ;;  %v3254_v29 = vpop.f32.mrb[132].mxu1 }
 0x9b4   : > { %v2640_v1 = vadd.f32 %v3254_v29, %v3098_v24  ;;  %v2631_v35 = vpop.f32.mrb[133].mxu1  ;;  %2699 = vmax.xlane.f32.xlu0 %v2682_v27 }
 0x9b5   : > { %v3255_v2 = vpop.f32.mrb[134].mxu1  ;;  %v2632_v10 = vadd.f32 %v3098_v24, %v2631_v35 }
 0x9b6   : > { %v2643_v8 = vadd.f32 %v3255_v2, %v3098_v24  ;;  %v2687_v9 = vsel %vm2680_vm0, %v2640_v1, -1e+30  ;;  %v2634_v37 = vpop.f32.mrb[135].mxu1 }
 0x9b7   : > { %v2635_v12 = vadd.f32 %v3098_v24, %v2634_v37  ;;  %v2685_v14 = vsel %vm2680_vm0, %v2632_v10, -1e+30 }
 0x9b8   : > { %2709 = vmax.xlane.f32.xlu0 %v2687_v9  ;;  %v2688_v11 = vsel %vm2680_vm0, %v2643_v8, -1e+30 }
 0x9b9   : > { %2711 = vmax.xlane.f32.xlu1 %v2688_v11  ;;  %v2686_v17 = vsel %vm2680_vm0, %v2635_v12, -1e+30 }
 0x9bb   : > { %v3258_v13 = vpop.f32.mrb[136].mxu1 }
 0x9bc   : > { %v2656_v15 = vadd.f32 %v3258_v13, %v3098_v24  ;;  %v2647_v16 = vpop.f32.mrb[137].mxu1  ;;  %2705 = vmax.xlane.f32.xlu0 %v2685_v14 }
 0x9bd   : > { %v3259_v18 = vpop.f32.mrb[138].mxu1  ;;  %2707 = vmax.xlane.f32.xlu1 %v2686_v17  ;;  %v2648_v41 = vadd.f32 %v3098_v24, %v2647_v16 }
 0x9be   : > { %v2659_v19 = vadd.f32 %v3259_v18, %v3098_v24  ;;  %v2691_v20 = vsel %vm2680_vm0, %v2656_v15, -1e+30  ;;  %v2650_v40 = vpop.f32.mrb[139].mxu1 }
 0x9bf   : > { %v2651_v42 = vadd.f32 %v3098_v24, %v2650_v40  ;;  %v4332_v47 = vsel %vm2680_vm0, %v2648_v41, -1e+30 }
 0x9c0   : > { %2717 = vmax.xlane.f32.xlu0 %v2691_v20  ;;  %v2692_v43 = vsel %vm2680_vm0, %v2659_v19, -1e+30 }
 0x9c1   : > { %2719 = vmax.xlane.f32.xlu1 %v2692_v43  ;;  %v4337_v49 = vsel %vm2680_vm0, %v2651_v42, -1e+30 }
 0x9c3   : > { %v3262_v44 = vpop.f32.mrb[140].mxu1 }
 0x9c4   : > { %v2663_v48 = vpop.f32.mrb[141].mxu1  ;;  %2713 = vmax.xlane.f32.xlu0 %v4332_v47  ;;  %v2672_v51 = vadd.f32 %v3262_v44, %v3098_v24 }
 0x9c5   : > { %v2664_v50 = vadd.f32 %v3098_v24, %v2663_v48  ;;  %v3263_v38 = vpop.f32.mrb[142].mxu1  ;;  %2715 = vmax.xlane.f32.xlu1 %v4337_v49 }
 0x9c6   : > { %v2666_v39 = vpop.f32.mrb[143].mxu1  ;;  %v2675_v54 = vadd.f32 %v3263_v38, %v3098_v24  ;;  %v4352_v45 = vsel %vm2680_vm0, %v2672_v51, -1e+30 }
 0x9c7   : > { %v2667_v52 = vadd.f32 %v3098_v24, %v2666_v39  ;;  %v4342_v53 = vsel %vm2680_vm0, %v2664_v50, -1e+30 }
 0x9c8   : > { %2721 = vmax.xlane.f32.xlu0 %v4342_v53  ;;  %v4357_v46 = vsel %vm2680_vm0, %v2675_v54, -1e+30 }
 0x9c9   : > { %v4347_v55 = vsel %vm2680_vm0, %v2667_v52, -1e+30 }
 0x9ca   : > { %2723 = vmax.xlane.f32.xlu1 %v4347_v55 }
 0x9cc   : > { %2725 = vmax.xlane.f32.xlu0 %v4352_v45 }
 0x9ce   : > { %2727 = vmax.xlane.f32.xlu1 %v4357_v46 }
 0xa3c   : > { %v2702_v56 = vpop.xlane.xlu1 %2701 }
 0xa3d   : > { %v4360_v57 = vsub.f32 %v2683_v31, %v2702_v56  ;;  %v2698_v58 = vpop.xlane.xlu0 %2697 }
 0xa3e   : > { %v4362_v59 = vsub.f32 %v2681_v33, %v2698_v58 }
 0xa3f   : > { %v2749_v60 = vmul.f32 1.442695, %v4360_v57 }
 0xa40   : > { %v2745_v61 = vmul.f32 1.442695, %v4362_v59  ;;  %v2704_v62 = vpop.xlane.xlu1 %2703 }
 0xa41   : > { %3473 = vpow2.f32 %v2749_v60  ;;  %v4366_v63 = vsub.f32 %v2684_v28, %v2704_v62  ;;  %v2700_v0 = vpop.xlane.xlu0 %2699 }
 0xa42   : > { %v4368_v32 = vsub.f32 %v2682_v27, %v2700_v0  ;;  %3475 = vpow2.f32 %v2745_v61 }
 0xa43   : > { %v2751_v3 = vmul.f32 1.442695, %v4366_v63 }
 0xa44   : > { %v2747_v4 = vmul.f32 1.442695, %v4368_v32 }
 0xa45   : > { %3477 = vpow2.f32 %v2751_v3  ;;  %v2710_v5 = vpop.xlane.xlu0 %2709 }
 0xa46   : > { %v4372_v6 = vsub.f32 %v2687_v9, %v2710_v5  ;;  %v2712_v23 = vpop.xlane.xlu1 %2711  ;;  %3479 = vpow2.f32 %v2747_v4 }
 0xa47   : > { %v4374_v24 = vsub.f32 %v2688_v11, %v2712_v23 }
 0xa48   : > { %v2757_v21 = vmul.f32 1.442695, %v4372_v6 }
 0xa49   : > { %v2759_v22 = vmul.f32 1.442695, %v4374_v24  ;;  %v2706_v30 = vpop.xlane.xlu0 %2705 }
 0xa4a   : > { %3481 = vpow2.f32 %v2757_v21  ;;  %v4378_v25 = vsub.f32 %v2685_v14, %v2706_v30  ;;  %v2708_v7 = vpop.xlane.xlu1 %2707 }
 0xa4b   : > { %v3474_v31 = vpop.eup %3473  ;;  %v4380_v34 = vsub.f32 %v2686_v17, %v2708_v7  ;;  %3483 = vpow2.f32 %v2759_v22 }
 0xa4c   : > { %v2753_v26 = vmul.f32 1.442695, %v4378_v25  ;;  %2781 = vadd.xlane.f32.xlu0 %v3474_v31  ;;  %v3476_v28 = vpop.eup %3475 }
 0xa4d   : > { %v2755_v36 = vmul.f32 1.442695, %v4380_v34  ;;  %v2718_v33 = vpop.xlane.xlu0 %2717 }
 0xa4e   : > { %3485 = vpow2.f32 %v2753_v26  ;;  %v4384_v29 = vsub.f32 %v2691_v20, %v2718_v33  ;;  %v2720_v27 = vpop.xlane.xlu1 %2719 }
 0xa4f   : > { %v3478_v1 = vpop.eup %3477  ;;  %v4386_v35 = vsub.f32 %v2692_v43, %v2720_v27  ;;  %3487 = vpow2.f32 %v2755_v36 }
 0xa50   : > { %v2765_v2 = vmul.f32 1.442695, %v4384_v29  ;;  %2783 = vadd.xlane.f32.xlu1 %v3478_v1  ;;  %2777 = vadd.xlane.f32.xlu0 %v3476_v28  ;;  %v3480_v11 = vpop.eup %3479 }
 0xa51   : > { %v2767_v8 = vmul.f32 1.442695, %v4386_v35  ;;  %v2714_v9 = vpop.xlane.xlu0 %2713 }
 0xa52   : > { %3489 = vpow2.f32 %v2765_v2  ;;  %v4391_v37 = vsub.f32 %v4332_v47, %v2714_v9  ;;  %v2716_v10 = vpop.xlane.xlu1 %2715 }
 0xa53   : > { %v4394_v12 = vsub.f32 %v4337_v49, %v2716_v10  ;;  %3491 = vpow2.f32 %v2767_v8 }
 0xa54   : > { %v3482_v13 = vpop.eup %3481  ;;  %v2761_v14 = vmul.f32 1.442695, %v4391_v37  ;;  %2779 = vadd.xlane.f32.xlu1 %v3480_v11 }
 0xa55   : > { %v2763_v15 = vmul.f32 1.442695, %v4394_v12  ;;  %2789 = vadd.xlane.f32.xlu0 %v3482_v13  ;;  %v2722_v16 = vpop.xlane.xlu0 %2721  ;;  %v3484_v18 = vpop.eup %3483 }
 0xa56   : > { %3493 = vpow2.f32 %v2761_v14  ;;  %v4399_v17 = vsub.f32 %v4342_v53, %v2722_v16 }
 0xa57   : > { %v2724_v19 = vpop.xlane.xlu1 %2723  ;;  %3495 = vpow2.f32 %v2763_v15 }
 0xa58   : > { %v3486_v20 = vpop.eup %3485  ;;  %v2769_v40 = vmul.f32 1.442695, %v4399_v17  ;;  %v4403_v41 = vsub.f32 %v4347_v55, %v2724_v19  ;;  %2791 = vadd.xlane.f32.xlu1 %v3484_v18 }
 0xa59   : > { %2785 = vadd.xlane.f32.xlu0 %v3486_v20  ;;  %v2726_v42 = vpop.xlane.xlu0 %2725  ;;  %v3488_v47 = vpop.eup %3487 }
 0xa5a   : > { %3497 = vpow2.f32 %v2769_v40  ;;  %v2771_v43 = vmul.f32 1.442695, %v4403_v41  ;;  %v4407_v44 = vsub.f32 %v4352_v45, %v2726_v42 }
 0xa5b   : > { %v2728_v48 = vpop.xlane.xlu1 %2727 }
 0xa5c   : > { %v3490_v49 = vpop.eup %3489  ;;  %3499 = vpow2.f32 %v2771_v43  ;;  %v2773_v50 = vmul.f32 1.442695, %v4407_v44  ;;  %v4411_v38 = vsub.f32 %v4357_v46, %v2728_v48  ;;  %2787 = vadd.xlane.f32.xlu1 %v3488_v47 }
 0xa5d   : > { %2797 = vadd.xlane.f32.xlu0 %v3490_v49  ;;  %v3492_v51 = vpop.eup %3491 }
 0xa5e   : > { %3501 = vpow2.f32 %v2773_v50  ;;  %v2775_v39 = vmul.f32 1.442695, %v4411_v38 }
 0xa60   : > { %v3494_v52 = vpop.eup %3493  ;;  %3503 = vpow2.f32 %v2775_v39  ;;  %2799 = vadd.xlane.f32.xlu1 %v3492_v51 }
 0xa61   : > { %2793 = vadd.xlane.f32.xlu0 %v3494_v52  ;;  %v3496_v53 = vpop.eup %3495 }
 0xa64   : > { %v3498_v54 = vpop.eup %3497  ;;  %2795 = vadd.xlane.f32.xlu1 %v3496_v53 }
 0xa65   : > { %2801 = vadd.xlane.f32.xlu0 %v3498_v54 }
 0xa66   : > { %v3500_v55 = vpop.eup %3499 }
 0xa68   : > { %v3502_v45 = vpop.eup %3501  ;;  %2803 = vadd.xlane.f32.xlu1 %v3500_v55 }
 0xa69   : > { %2805 = vadd.xlane.f32.xlu0 %v3502_v45 }
 0xa6a   : > { %v3504_v46 = vpop.eup %3503 }
 0xa6c   : > { %2807 = vadd.xlane.f32.xlu1 %v3504_v46 }
 0xad9   : > { %v2782_v56 = vpop.xlane.xlu0 %2781 }
 0xada   : > { %3505 = vlog2.f32 %v2782_v56 }
 0xadd   : > { %v2784_v58 = vpop.xlane.xlu1 %2783  ;;  %v2778_v60 = vpop.xlane.xlu0 %2777 }
 0xade   : > { %3507 = vlog2.f32 %v2784_v58 }
 0xadf   : > { %3509 = vlog2.f32 %v2778_v60 }
 0xae1   : > { %v2780_v61 = vpop.xlane.xlu1 %2779 }
 0xae2   : > { %3511 = vlog2.f32 %v2780_v61  ;;  %v2790_v62 = vpop.xlane.xlu0 %2789 }
 0xae3   : > { %3513 = vlog2.f32 %v2790_v62 }
 0xae4   : > { %v3506_v0 = vpop.eup %3505 }
 0xae5   : > { %v2814_v3 = vmul.f32 0.6931472, %v3506_v0  ;;  %v2792_v4 = vpop.xlane.xlu1 %2791 }
 0xae6   : > { %3515 = vlog2.f32 %v2792_v4  ;;  %v2786_v5 = vpop.xlane.xlu0 %2785 }
 0xae7   : > { %v2843_v23 = vsub.f32 %v4360_v57, %v2814_v3  ;;  %3517 = vlog2.f32 %v2786_v5 }
 0xae8   : > { %v3508_v21 = vpop.eup %3507 }
 0xae9   : > { %v3510_v22 = vpop.eup %3509  ;;  %2859 = vst [vmem:[%s4418_s15 + $0x10] sm:$0xff] %v2843_v23  ;;  %v2816_v30 = vmul.f32 0.6931472, %v3508_v21  ;;  %v2788_v7 = vpop.xlane.xlu1 %2787 }
 0xaea   : > { %v2810_v31 = vmul.f32 0.6931472, %v3510_v22  ;;  %3519 = vlog2.f32 %v2788_v7  ;;  %v2798_v26 = vpop.xlane.xlu0 %2797 }
 0xaeb   : > { %v2844_v36 = vsub.f32 %v4366_v63, %v2816_v30  ;;  %3521 = vlog2.f32 %v2798_v26 }
 0xaec   : > { %v3512_v33 = vpop.eup %3511  ;;  %v2841_v28 = vsub.f32 %v4362_v59, %v2810_v31 }
 0xaed   : > { %v3514_v27 = vpop.eup %3513  ;;  %2860 = vst [vmem:[%s4418_s15 + $0x18] sm:$0xff] %v2844_v36  ;;  %v2812_v57 = vmul.f32 0.6931472, %v3512_v33  ;;  %v2800_v1 = vpop.xlane.xlu1 %2799 }
 0xaee   : > { %2857 = vst [vmem:[%s4418_s15] sm:$0xff] %v2841_v28  ;;  %v2822_v2 = vmul.f32 0.6931472, %v3514_v27  ;;  %3523 = vlog2.f32 %v2800_v1  ;;  %v2794_v8 = vpop.xlane.xlu0 %2793 }
 0xaef   : > { %v2842_v9 = vsub.f32 %v4368_v32, %v2812_v57  ;;  %3525 = vlog2.f32 %v2794_v8 }
 0xaf0   : > { %v3516_v10 = vpop.eup %3515  ;;  %v2847_v63 = vsub.f32 %v4372_v6, %v2822_v2 }
 0xaf1   : > { %v3518_v11 = vpop.eup %3517  ;;  %2858 = vst [vmem:[%s4418_s15 + $0x8] sm:$0xff] %v2842_v9  ;;  %v2824_v59 = vmul.f32 0.6931472, %v3516_v10  ;;  %v2796_v13 = vpop.xlane.xlu1 %2795 }
 0xaf2   : > { %2863 = vst [vmem:[%s4418_s15 + $0x30] sm:$0xff] %v2847_v63  ;;  %v2818_v14 = vmul.f32 0.6931472, %v3518_v11  ;;  %3527 = vlog2.f32 %v2796_v13  ;;  %v2802_v15 = vpop.xlane.xlu0 %2801 }
 0xaf3   : > { %v2848_v16 = vsub.f32 %v4374_v24, %v2824_v59  ;;  %3529 = vlog2.f32 %v2802_v15 }
 0xaf4   : > { %v3520_v18 = vpop.eup %3519  ;;  %v2845_v32 = vsub.f32 %v4378_v25, %v2818_v14 }
 0xaf5   : > { %v3522_v19 = vpop.eup %3521  ;;  %2864 = vst [vmem:[%s4418_s15 + $0x38] sm:$0xff] %v2848_v16  ;;  %v2820_v6 = vmul.f32 0.6931472, %v3520_v18  ;;  %v2804_v20 = vpop.xlane.xlu1 %2803 }
 0xaf6   : > { %2861 = vst [vmem:[%s4418_s15 + $0x20] sm:$0xff] %v2845_v32  ;;  %v2830_v40 = vmul.f32 0.6931472, %v3522_v19  ;;  %3531 = vlog2.f32 %v2804_v20  ;;  %v2806_v42 = vpop.xlane.xlu0 %2805 }
 0xaf7   : > { %v2846_v43 = vsub.f32 %v4380_v34, %v2820_v6  ;;  %3533 = vlog2.f32 %v2806_v42 }
 0xaf8   : > { %v3524_v24 = vpop.eup %3523  ;;  %v2851_v47 = vsub.f32 %v4384_v29, %v2830_v40 }
 0xaf9   : > { %v3526_v48 = vpop.eup %3525  ;;  %2862 = vst [vmem:[%s4418_s15 + $0x28] sm:$0xff] %v2846_v43  ;;  %v2832_v25 = vmul.f32 0.6931472, %v3524_v24  ;;  %v2808_v49 = vpop.xlane.xlu1 %2807 }
 0xafa   : > { %2867 = vst [vmem:[%s4418_s15 + $0x50] sm:$0xff] %v2851_v47  ;;  %v2826_v50 = vmul.f32 0.6931472, %v3526_v48  ;;  %3535 = vlog2.f32 %v2808_v49 }
 0xafb   : > { %v2852_v39 = vsub.f32 %v4386_v35, %v2832_v25 }
 0xafc   : > { %v3528_v51 = vpop.eup %3527  ;;  %v2849_v52 = vsub.f32 %v4391_v37, %v2826_v50 }
 0xafd   : > { %v3530_v34 = vpop.eup %3529  ;;  %2868 = vst [vmem:[%s4418_s15 + $0x58] sm:$0xff] %v2852_v39  ;;  %v2828_v53 = vmul.f32 0.6931472, %v3528_v51 }
 0xafe   : > { %2865 = vst [vmem:[%s4418_s15 + $0x40] sm:$0xff] %v2849_v52  ;;  %v2834_v29 = vmul.f32 0.6931472, %v3530_v34 }
 0xaff   : > { %v2850_v54 = vsub.f32 %v4394_v12, %v2828_v53 }
 0xb00   : > { %v3532_v55 = vpop.eup %3531  ;;  %v2853_v45 = vsub.f32 %v4399_v17, %v2834_v29 }
 0xb01   : > { %v3534_v46 = vpop.eup %3533  ;;  %2866 = vst [vmem:[%s4418_s15 + $0x48] sm:$0xff] %v2850_v54  ;;  %v2836_v56 = vmul.f32 0.6931472, %v3532_v55 }
 0xb02   : > { %2869 = vst [vmem:[%s4418_s15 + $0x60] sm:$0xff] %v2853_v45  ;;  %v2838_v35 = vmul.f32 0.6931472, %v3534_v46 }
 0xb03   : > { %v2854_v37 = vsub.f32 %v4403_v41, %v2836_v56 }
 0xb04   : > { %v3536_v58 = vpop.eup %3535  ;;  %v2855_v60 = vsub.f32 %v4407_v44, %v2838_v35 }
 0xb05   : > { %2870 = vst [vmem:[%s4418_s15 + $0x68] sm:$0xff] %v2854_v37  ;;  %v2840_v61 = vmul.f32 0.6931472, %v3536_v58 }
 0xb06   : > { %2871 = vst [vmem:[%s4418_s15 + $0x70] sm:$0xff] %v2855_v60 }
 0xb07   : > { %v2856_v62 = vsub.f32 %v4411_v38, %v2840_v61 }
 0xb09   : > { %2872 = vst [vmem:[%s4418_s15 + $0x78] sm:$0xff] %v2856_v62 }
 0xb0a PF: > { %s19_s30 = sadd.s32 1, %s3552_s30  }
 0xb0b   : > { %p16_p4 = scmp.ge.s32.totalorder %s19_s30, 6  }
 0xb0d   :  { %18 = sbr.rel (!%p16_p4) target bundleno = 1 (0x1), region = 92 }

</bundles_post_ra>
